<compile_context>
chip_gen: v7x
topology: tpu7x:2x2x1
jax: 0.10.0
libtpu: 0.0.40
codegen_flags: <defaults>
</compile_context>

<pallas_src>
import math

import jax
import jax.numpy as jnp
from jax.experimental import pallas as pl
from jax.experimental.pallas import tpu as pltpu

_BIG = 1e30
_LANES = 128
# Budget for the double-buffered (tm, d_pad) + (tk, d_pad) feature tiles; keeps
# headroom inside v7x's 64 MiB physical VMEM (v5e/v6e have 128 MiB).
_TILE_VMEM_BUDGET = 48 * 1024 * 1024


def _make_triplet_kernel(margin, tm, tk, num_k):
    n_fold = tk // _LANES

    def kernel(xr_ref, xk_ref, sqc_ref, tc_ref, sqr_ref, tr_ref,
               out_ref, ap_acc, an_acc):
        kj = pl.program_id(1)        # key-tile index (reduction axis, last)

        @pl.when(kj == 0)
        def _init():
            ap_acc[...] = jnp.full(ap_acc.shape, -_BIG, jnp.float32)
            an_acc[...] = jnp.full(an_acc.shape, _BIG, jnp.float32)

        # Gram tile on the MXU; contract the feature axis of both operands
        # (NT matmul — no explicit transpose of the key tile).
        gram = jax.lax.dot_general(
            xr_ref[...], xk_ref[...],
            dimension_numbers=(((1,), (1,)), ((), ())),
            preferred_element_type=jnp.float32)                      # (tm, tk)

        # Resident key-rows; slice this step's tk columns (no per-step DMA).
        col0 = kj * tk
        sqr = sqr_ref[:, pl.ds(col0, tk)]                            # (1, tk) f32
        tr = tr_ref[:, pl.ds(col0, tk)]                              # (1, tk) i32

        # Mine on (||k||^2 - 2<a,k>); ||a||^2 is constant along the mining axis
        # and is added only in finalize (monotone => identical arg-max/min).
        part = sqr - 2.0 * gram                                      # (tm, tk)

        same = tc_ref[...] == tr                                     # (tm, tk)
        valid = tr >= 0                                              # pad label = -1

        ap_cand = jnp.where(same & valid, part, -_BIG)
        an_cand = jnp.where((~same) & valid, part, _BIG)

        # Lane-wise fold down to 128 lanes (pure VPU); cross-lane reduce is
        # deferred to finalize (one XLU reduce per row tile).
        ap = ap_acc[...]
        an = an_acc[...]
        for c in range(n_fold):
            sl = slice(c * _LANES, (c + 1) * _LANES)
            ap = jnp.maximum(ap, ap_cand[:, sl])
            an = jnp.minimum(an, an_cand[:, sl])
        ap_acc[...] = ap
        an_acc[...] = an

        @pl.when(kj == num_k - 1)
        def _finalize():
            sqc = sqc_ref[...]                                       # (tm, 1)
            d2_ap = jnp.max(ap_acc[...], axis=1, keepdims=True) + sqc
            d2_an = jnp.min(an_acc[...], axis=1, keepdims=True) + sqc
            dist_ap = jnp.sqrt(jnp.maximum(d2_ap, 1e-12))
            dist_an = jnp.sqrt(jnp.maximum(d2_an, 1e-12))
            hinge = jnp.maximum(dist_ap - dist_an + margin, 0.0)
            # Padded anchor rows carry label -1 -> contribute exactly 0.
            out_ref[...] = jnp.where(tc_ref[...] >= 0, hinge, 0.0)

    return kernel


def triplet_loss(inputs, targets, margin=0.3, tm=None, tk=None,
                 matmul_dtype=jnp.bfloat16):
    """Hard-mining triplet loss.  inputs: (n, d) float, targets: (n,) int >= 0."""
    n, d = inputs.shape
    d_pad = max(pl.cdiv(d, 128) * 128, 128)
    mm_dtype = jnp.dtype(inputs.dtype) if matmul_dtype is None else jnp.dtype(matmul_dtype)
    mm_bytes = mm_dtype.itemsize

    # Tile selection: start at 512 (fills the 256-wide MXU on v6e/v7x, cuts
    # per-grid-step overhead and the n^2*d/tm key re-stream), shrink until the
    # double-buffered feature tiles fit the v7x-safe VMEM budget, and never
    # exceed the 128-aligned problem size.
    n128 = max(pl.cdiv(n, 128) * 128, 128)
    if tm is None or tk is None:
        t = 512
        while t > 128 and 2 * (2 * t) * d_pad * mm_bytes > _TILE_VMEM_BUDGET:
            t //= 2
        tm = tm if tm is not None else min(t, n128)
        tk = tk if tk is not None else min(t, n128)
    tm = min(tm, n128)
    tk = min(tk, n128)
    assert tm % 128 == 0 and tk % 128 == 0, "tile sizes must be multiples of 128"

    tile = math.lcm(tm, tk)
    n_pad = pl.cdiv(n, tile) * tile
    num_k = n_pad // tk

    x_pad = jnp.pad(inputs, ((0, n_pad - n), (0, d_pad - d)))
    x_mm = x_pad if matmul_dtype is None else x_pad.astype(matmul_dtype)
    t_pad = jnp.pad(targets.astype(jnp.int32), (0, n_pad - n),
                    constant_values=-1)

    # Squared norms computed once from the matmul-dtype values (keeps the
    # d2 = ||a||^2 + ||k||^2 - 2<a,k> split self-consistent); both layouts are
    # passed so the kernel never transposes.
    sq = jnp.sum(jnp.square(x_mm.astype(jnp.float32)), axis=1)
    sq_col = sq.reshape(n_pad, 1)
    sq_row = sq.reshape(1, n_pad)
    t_col = t_pad.reshape(n_pad, 1)
    t_row = t_pad.reshape(1, n_pad)

    grid = (n_pad // tm, num_k)

    # Explicit scoped-VMEM limit with headroom (defaults: 16 MiB v5e / 32 MiB
    # v6e; v7x physical is 64 MiB so never ask for more than that).
    vmem_est = (2 * (tm + tk) * d_pad * mm_bytes     # double-buffered feature tiles
                + 4 * n_pad * 4 * 2                  # resident ||x||^2 / label rows
                + 2 * tm * 4 * 3 * 2                 # (tm,1) norm/label/out blocks
                + 2 * tm * _LANES * 4)               # ap/an accumulators
    vmem_limit = int(min(64 * 1024 * 1024,
                         max(32 * 1024 * 1024, vmem_est + (8 << 20))))

    hinge = pl.pallas_call(
        _make_triplet_kernel(float(margin), tm, tk, num_k),
        out_shape=jax.ShapeDtypeStruct((n_pad, 1), jnp.float32),
        grid_spec=pltpu.PrefetchScalarGridSpec(
            num_scalar_prefetch=0,
            grid=grid,
            in_specs=[
                pl.BlockSpec((tm, d_pad), lambda i, k: (i, 0)),   # anchor rows
                pl.BlockSpec((tk, d_pad), lambda i, k: (k, 0)),   # key rows
                pl.BlockSpec((tm, 1), lambda i, k: (i, 0)),       # ||a||^2 col
                pl.BlockSpec((tm, 1), lambda i, k: (i, 0)),       # labels col
                pl.BlockSpec((1, n_pad), lambda i, k: (0, 0)),    # ||k||^2 row (resident)
                pl.BlockSpec((1, n_pad), lambda i, k: (0, 0)),    # labels row (resident)
            ],
            out_specs=pl.BlockSpec((tm, 1), lambda i, k: (i, 0)),
            scratch_shapes=[pltpu.VMEM((tm, _LANES), jnp.float32),   # hardest-pos partial
                            pltpu.VMEM((tm, _LANES), jnp.float32)],  # hardest-neg partial
        ),
        compiler_params=pltpu.CompilerParams(
            # Row axis "parallel" -> v7x megacore splits anchor tiles across its
            # two TensorCores; the key (reduction) axis stays "arbitrary" so the
            # scratch carry is legal.
            dimension_semantics=("parallel", "arbitrary"),
            vmem_limit_bytes=vmem_limit),
    )(x_mm, x_mm, sq_col, t_col, sq_row, t_row)

    # Padded rows were zeroed in-kernel; divide by the true n.
    return jnp.sum(hinge) / jnp.float32(n)


def _reference_triplet_loss(inputs, targets, margin=0.3, matmul_dtype=None):
    """Pure-JAX reference mirroring the PyTorch module."""
    xm = inputs.astype(jnp.float32 if matmul_dtype is None else matmul_dtype)
    sq = jnp.sum(jnp.square(xm.astype(jnp.float32)), axis=1, keepdims=True)
    gram = jax.lax.dot_general(
        xm, xm, dimension_numbers=(((1,), (1,)), ((), ())),
        preferred_element_type=jnp.float32,
        precision=jax.lax.Precision.HIGHEST if matmul_dtype is None else None)
    d2 = sq + sq.T - 2.0 * gram
    dist = jnp.sqrt(jnp.maximum(d2, 1e-12))
    mask = targets[:, None] == targets[None, :]
    dist_ap = jnp.max(jnp.where(mask, dist, -jnp.inf), axis=1)
    dist_an = jnp.min(jnp.where(mask, jnp.inf, dist), axis=1)
    return jnp.mean(jnp.maximum(dist_ap - dist_an + margin, 0.0))


if __name__ == "__main__":
    key = jax.random.PRNGKey(0)
    k1, k2 = jax.random.split(key)

    # Small demo consistent with the module: 4 classes x 2 samples, feat_dim=32.
    n, feat = 8, 32
    x = jax.random.normal(k1, (n, feat), dtype=jnp.float32)
    t = jnp.array([0, 0, 1, 1, 2, 2, 3, 3], dtype=jnp.int32)

    # f32 Gram path (closest to the PyTorch reference).
    loss_f32 = jax.block_until_ready(triplet_loss(x, t, margin=0.3, matmul_dtype=None))
    ref_f32 = _reference_triplet_loss(x, t, margin=0.3)
    assert jnp.allclose(loss_f32, ref_f32, rtol=1e-3, atol=1e-3), (loss_f32, ref_f32)

    # Default fast path: bf16 Gram on the MXU, f32 norms / mining / finalize.
    loss_bf = jax.block_until_ready(triplet_loss(x, t, margin=0.3))
    ref_bf = _reference_triplet_loss(x, t, margin=0.3, matmul_dtype=jnp.bfloat16)
    assert jnp.allclose(loss_bf, ref_bf, rtol=1e-2, atol=1e-2), (loss_bf, ref_bf)

    # Multi-tile + padding path: force 128 tiles -> grid 3x3, n and d not tile
    # multiples, exercises the cross-key-tile accumulation.
    n2, feat2 = 300, 200
    x2 = jax.random.normal(k2, (n2, feat2), dtype=jnp.float32)
    t2 = jnp.arange(n2, dtype=jnp.int32) % 50
    loss2 = jax.block_until_ready(
        triplet_loss(x2, t2, margin=0.3, tm=128, tk=128, matmul_dtype=None))
    ref2 = _reference_triplet_loss(x2, t2, margin=0.3)
    assert jnp.allclose(loss2, ref2, rtol=1e-3, atol=1e-3), (loss2, ref2)

    # Same problem with auto-selected (larger) tiles + bf16 fast path.
    loss2_bf = jax.block_until_ready(triplet_loss(x2, t2, margin=0.3))
    ref2_bf = _reference_triplet_loss(x2, t2, margin=0.3, matmul_dtype=jnp.bfloat16)
    assert jnp.allclose(loss2_bf, ref2_bf, rtol=1e-2, atol=2e-2), (loss2_bf, ref2_bf)

    print("KERNEL_OK")
</pallas_src>

<mosaic_0001>
module attributes {stable_mosaic.version = 11 : i64} {
  func.func @kernel(%arg0: i32, %arg1: i32, %arg2: memref<128x128xf32, #tpu.memory_space<vmem>>, %arg3: memref<128x128xf32, #tpu.memory_space<vmem>>, %arg4: memref<128x1xf32, #tpu.memory_space<vmem>>, %arg5: memref<128x1xi32, #tpu.memory_space<vmem>>, %arg6: memref<1x128xf32, #tpu.memory_space<vmem>>, %arg7: memref<1x128xi32, #tpu.memory_space<vmem>>, %arg8: memref<128x1xf32, #tpu.memory_space<vmem>>, %arg9: memref<128x128xf32, #tpu.memory_space<vmem>>, %arg10: memref<128x128xf32, #tpu.memory_space<vmem>>) attributes {dimension_semantics = [#tpu.dimension_semantics<parallel>, #tpu.dimension_semantics<arbitrary>], iteration_bounds = array<i64: 1, 1>, scalar_prefetch = 0 : i64, scratch_operands = 2 : i64, tpu.core_type = #tpu.core_type<tc>, window_params = [{transform_indices = @transform_0, window_bounds = array<i64: 128, 128>}, {transform_indices = @transform_1, window_bounds = array<i64: 128, 128>}, {transform_indices = @transform_2, window_bounds = array<i64: 128, 1>}, {transform_indices = @transform_3, window_bounds = array<i64: 128, 1>}, {pipeline_mode = #tpu.pipeline_mode<synchronous>, transform_indices = @transform_4, window_bounds = array<i64: 1, 128>}, {pipeline_mode = #tpu.pipeline_mode<synchronous>, transform_indices = @transform_5, window_bounds = array<i64: 1, 128>}, {transform_indices = @transform_6, window_bounds = array<i64: 128, 1>}]} {
    %c0_i32 = arith.constant 0 : i32
    %0 = arith.cmpi eq, %arg1, %c0_i32 : i32
    %1 = arith.extui %0 : i1 to i32
    %c0_i32_0 = arith.constant 0 : i32
    %2 = arith.cmpi ne, %1, %c0_i32_0 : i32
    scf.if %2 {
      %cst_23 = arith.constant -1.000000e+30 : f32
      %39 = vector.broadcast %cst_23 : f32 to vector<128x128xf32>
      %c0_24 = arith.constant 0 : index
      %c0_25 = arith.constant 0 : index
      %40 = vector.load %arg9[%c0_24, %c0_25] : memref<128x128xf32, #tpu.memory_space<vmem>>, vector<128x128xf32>
      tpu.vector_store %arg9[%c0_24, %c0_25], %39 {strides = array<i32>} : memref<128x128xf32, #tpu.memory_space<vmem>>, vector<128x128xf32>,
      %cst_26 = arith.constant 1.000000e+30 : f32
      %41 = vector.broadcast %cst_26 : f32 to vector<128x128xf32>
      %c0_27 = arith.constant 0 : index
      %c0_28 = arith.constant 0 : index
      %42 = vector.load %arg10[%c0_27, %c0_28] : memref<128x128xf32, #tpu.memory_space<vmem>>, vector<128x128xf32>
      tpu.vector_store %arg10[%c0_27, %c0_28], %41 {strides = array<i32>} : memref<128x128xf32, #tpu.memory_space<vmem>>, vector<128x128xf32>,
    } else {
    }
    %c0 = arith.constant 0 : index
    %c0_1 = arith.constant 0 : index
    %3 = vector.load %arg2[%c0, %c0_1] : memref<128x128xf32, #tpu.memory_space<vmem>>, vector<128x128xf32>
    %c0_2 = arith.constant 0 : index
    %c0_3 = arith.constant 0 : index
    %4 = vector.load %arg3[%c0_2, %c0_3] : memref<128x128xf32, #tpu.memory_space<vmem>>, vector<128x128xf32>
    %cst = arith.constant dense<0.000000e+00> : vector<128x128xf32>
    %5 = tpu.matmul %3, %4, %cst {dimension_numbers = #tpu.dot_dimension_numbers<[1], [1], [0], [0], [0, 0, 1, 0], [], []>} : vector<128x128xf32>, vector<128x128xf32>, vector<128x128xf32> -> vector<128x128xf32>
    %c128_i32 = arith.constant 128 : i32
    %6 = arith.muli %arg1, %c128_i32 : i32
    %c0_4 = arith.constant 0 : index
    %7 = arith.index_cast %6 : i32 to index
    %8 = vector.load %arg6[%c0_4, %7] : memref<1x128xf32, #tpu.memory_space<vmem>>, vector<1x128xf32>
    %c0_5 = arith.constant 0 : index
    %9 = arith.index_cast %6 : i32 to index
    %10 = vector.load %arg7[%c0_5, %9] : memref<1x128xi32, #tpu.memory_space<vmem>>, vector<1x128xi32>
    %cst_6 = arith.constant 2.000000e+00 : f32
    %11 = vector.broadcast %cst_6 : f32 to vector<128x128xf32>
    %12 = arith.mulf %11, %5 : vector<128x128xf32>
    %13 = vector.broadcast %8 : vector<1x128xf32> to vector<128x128xf32>
    %14 = arith.subf %13, %12 : vector<128x128xf32>
    %c0_7 = arith.constant 0 : index
    %c0_8 = arith.constant 0 : index
    %15 = vector.load %arg5[%c0_7, %c0_8] : memref<128x1xi32, #tpu.memory_space<vmem>>, vector<128x1xi32>
    %16 = vector.broadcast %15 : vector<128x1xi32> to vector<128x128xi32>
    %17 = vector.broadcast %10 : vector<1x128xi32> to vector<128x128xi32>
    %18 = arith.cmpi eq, %16, %17 : vector<128x128xi32>
    %c0_i32_9 = arith.constant 0 : i32
    %19 = vector.broadcast %c0_i32_9 : i32 to vector<1x128xi32>
    %20 = arith.cmpi sge, %10, %19 : vector<1x128xi32>
    %21 = vector.broadcast %20 : vector<1x128xi1> to vector<128x128xi1>
    %22 = arith.andi %18, %21 : vector<128x128xi1>
    %cst_10 = arith.constant -1.000000e+30 : f32
    %23 = vector.broadcast %cst_10 : f32 to vector<128x128xf32>
    %24 = arith.select %22, %14, %23 : vector<128x128xi1>, vector<128x128xf32>
    %cst_11 = arith.constant dense<true> : vector<128x128xi1>
    %25 = arith.xori %18, %cst_11 : vector<128x128xi1>
    %26 = vector.broadcast %20 : vector<1x128xi1> to vector<128x128xi1>
    %27 = arith.andi %25, %26 : vector<128x128xi1>
    %cst_12 = arith.constant 1.000000e+30 : f32
    %28 = vector.broadcast %cst_12 : f32 to vector<128x128xf32>
    %29 = arith.select %27, %14, %28 : vector<128x128xi1>, vector<128x128xf32>
    %c0_13 = arith.constant 0 : index
    %c0_14 = arith.constant 0 : index
    %30 = vector.load %arg9[%c0_13, %c0_14] : memref<128x128xf32, #tpu.memory_space<vmem>>, vector<128x128xf32>
    %c0_15 = arith.constant 0 : index
    %c0_16 = arith.constant 0 : index
    %31 = vector.load %arg10[%c0_15, %c0_16] : memref<128x128xf32, #tpu.memory_space<vmem>>, vector<128x128xf32>
    %32 = arith.maximumf %30, %24 : vector<128x128xf32>
    %33 = arith.minimumf %31, %29 : vector<128x128xf32>
    %c0_17 = arith.constant 0 : index
    %c0_18 = arith.constant 0 : index
    %34 = vector.load %arg9[%c0_17, %c0_18] : memref<128x128xf32, #tpu.memory_space<vmem>>, vector<128x128xf32>
    tpu.vector_store %arg9[%c0_17, %c0_18], %32 {strides = array<i32>} : memref<128x128xf32, #tpu.memory_space<vmem>>, vector<128x128xf32>,
    %c0_19 = arith.constant 0 : index
    %c0_20 = arith.constant 0 : index
    %35 = vector.load %arg10[%c0_19, %c0_20] : memref<128x128xf32, #tpu.memory_space<vmem>>, vector<128x128xf32>
    tpu.vector_store %arg10[%c0_19, %c0_20], %33 {strides = array<i32>} : memref<128x128xf32, #tpu.memory_space<vmem>>, vector<128x128xf32>,
    %c0_i32_21 = arith.constant 0 : i32
    %36 = arith.cmpi eq, %arg1, %c0_i32_21 : i32
    %37 = arith.extui %36 : i1 to i32
    %c0_i32_22 = arith.constant 0 : i32
    %38 = arith.cmpi ne, %37, %c0_i32_22 : i32
    scf.if %38 {
      %c0_23 = arith.constant 0 : index
      %c0_24 = arith.constant 0 : index
      %39 = vector.load %arg4[%c0_23, %c0_24] : memref<128x1xf32, #tpu.memory_space<vmem>>, vector<128x1xf32>
      %c0_25 = arith.constant 0 : index
      %c0_26 = arith.constant 0 : index
      %40 = vector.load %arg9[%c0_25, %c0_26] : memref<128x128xf32, #tpu.memory_space<vmem>>, vector<128x128xf32>
      %cst_27 = arith.constant dense<0xFF800000> : vector<128xf32>
      %41 = vector.multi_reduction <maximumf>, %40, %cst_27 [1] : vector<128x128xf32> to vector<128xf32>
      %42 = vector.shape_cast %41 : vector<128xf32> to vector<128x1xf32>
      %43 = arith.addf %42, %39 : vector<128x1xf32>
      %c0_28 = arith.constant 0 : index
      %c0_29 = arith.constant 0 : index
      %44 = vector.load %arg10[%c0_28, %c0_29] : memref<128x128xf32, #tpu.memory_space<vmem>>, vector<128x128xf32>
      %cst_30 = arith.constant dense<0x7F800000> : vector<128xf32>
      %45 = vector.multi_reduction <minimumf>, %44, %cst_30 [1] : vector<128x128xf32> to vector<128xf32>
      %46 = vector.shape_cast %45 : vector<128xf32> to vector<128x1xf32>
      %47 = arith.addf %46, %39 : vector<128x1xf32>
      %cst_31 = arith.constant 9.99999996E-13 : f32
      %48 = vector.broadcast %cst_31 : f32 to vector<128x1xf32>
      %49 = arith.maximumf %43, %48 : vector<128x1xf32>
      %50 = math.sqrt %49 : vector<128x1xf32>
      %cst_32 = arith.constant 9.99999996E-13 : f32
      %51 = vector.broadcast %cst_32 : f32 to vector<128x1xf32>
      %52 = arith.maximumf %47, %51 : vector<128x1xf32>
      %53 = math.sqrt %52 : vector<128x1xf32>
      %54 = arith.subf %50, %53 : vector<128x1xf32>
      %cst_33 = arith.constant 3.000000e-01 : f32
      %55 = vector.broadcast %cst_33 : f32 to vector<128x1xf32>
      %56 = arith.addf %54, %55 : vector<128x1xf32>
      %cst_34 = arith.constant 0.000000e+00 : f32
      %57 = vector.broadcast %cst_34 : f32 to vector<128x1xf32>
      %58 = arith.maximumf %56, %57 : vector<128x1xf32>
      %c0_35 = arith.constant 0 : index
      %c0_36 = arith.constant 0 : index
      %59 = vector.load %arg5[%c0_35, %c0_36] : memref<128x1xi32, #tpu.memory_space<vmem>>, vector<128x1xi32>
      %c0_i32_37 = arith.constant 0 : i32
      %60 = vector.broadcast %c0_i32_37 : i32 to vector<128x1xi32>
      %61 = arith.cmpi sge, %59, %60 : vector<128x1xi32>
      %cst_38 = arith.constant 0.000000e+00 : f32
      %62 = vector.broadcast %cst_38 : f32 to vector<128x1xf32>
      %63 = arith.select %61, %58, %62 : vector<128x1xi1>, vector<128x1xf32>
      %c0_39 = arith.constant 0 : index
      %c0_40 = arith.constant 0 : index
      %64 = vector.load %arg8[%c0_39, %c0_40] : memref<128x1xf32, #tpu.memory_space<vmem>>, vector<128x1xf32>
      tpu.vector_store %arg8[%c0_39, %c0_40], %63 {strides = array<i32>} : memref<128x1xf32, #tpu.memory_space<vmem>>, vector<128x1xf32>,
    } else {
    }
    return
  }
  func.func @transform_0(%arg0: i32, %arg1: i32) -> (i32, i32) {
    %c0_i32 = arith.constant 0 : i32
    %c0_i32_0 = arith.constant 0 : i32
    return %arg0, %c0_i32 : i32, i32
  }
  func.func @transform_1(%arg0: i32, %arg1: i32) -> (i32, i32) {
    %c0_i32 = arith.constant 0 : i32
    %c0_i32_0 = arith.constant 0 : i32
    return %arg1, %c0_i32 : i32, i32
  }
  func.func @transform_2(%arg0: i32, %arg1: i32) -> (i32, i32) {
    %c0_i32 = arith.constant 0 : i32
    %c0_i32_0 = arith.constant 0 : i32
    return %arg0, %c0_i32 : i32, i32
  }
  func.func @transform_3(%arg0: i32, %arg1: i32) -> (i32, i32) {
    %c0_i32 = arith.constant 0 : i32
    %c0_i32_0 = arith.constant 0 : i32
    return %arg0, %c0_i32 : i32, i32
  }
  func.func @transform_4(%arg0: i32, %arg1: i32) -> (i32, i32) {
    %c0_i32 = arith.constant 0 : i32
    %c0_i32_0 = arith.constant 0 : i32
    %c0_i32_1 = arith.constant 0 : i32
    return %c0_i32, %c0_i32_0 : i32, i32
  }
  func.func @transform_5(%arg0: i32, %arg1: i32) -> (i32, i32) {
    %c0_i32 = arith.constant 0 : i32
    %c0_i32_0 = arith.constant 0 : i32
    %c0_i32_1 = arith.constant 0 : i32
    return %c0_i32, %c0_i32_0 : i32, i32
  }
  func.func @transform_6(%arg0: i32, %arg1: i32) -> (i32, i32) {
    %c0_i32 = arith.constant 0 : i32
    %c0_i32_0 = arith.constant 0 : i32
    return %arg0, %c0_i32 : i32, i32
  }
}

</mosaic_0001>

<bundles_post_ra>
// kernel: tpu_custom_call.1
= control target key start
LH: loop header
LB: loop body
LE: loop exit
PB: predicated region body
PF: predicated region fallthrough
CT: control target
= control target key end

     0   :  { %v1279_v3 = vmov 0   ;;  %v345_v60 = vlaneseq  ;;  %vm2566_vm4 = vmmov 1   ;;  %s2557_s1 = inlined_call_operand.vmem [shape: f32[128,128], index: 1, kind: input, shape index: {}]   ;;  %s2558_s0 = inlined_call_operand.vmem [shape: f32[128,128], index: 0, kind: input, shape index: {}]   ;;  %s2559_s3 = inlined_call_operand.vmem [shape: s32[128,1], index: 3, kind: input, shape index: {}]   ;;  %s2560_s5 = inlined_call_operand.vmem [shape: s32[1,128], index: 5, kind: input, shape index: {}]   ;;  %s2561_s4 = inlined_call_operand.vmem [shape: f32[1,128], index: 4, kind: input, shape index: {}]   ;;  %s2562_s2 = inlined_call_operand.vmem [shape: f32[128,1], index: 2, kind: input, shape index: {}]   ;;  %s2563_s6 = inlined_call_operand.vmem [shape: f32[128,1], index: 6, kind: output, shape index: {}]  }
   0x1   :  { %v75_v0 = vld [vmem:[%s2557_s1] sm:$0xff]  ;;  %v76_v1 = vld [vmem:[%s2557_s1 + $0x8] sm:$0xff]  ;;  %v77_v2 = vld [vmem:[%s2557_s1 + $0x10] sm:$0xff]  ;;  %1210 = vset.pattern.permute.xlu1 %v1279_v3  ;;  %1209 = vset.pattern.permute.xlu0 %v1279_v3 }
   0x2   :  { %v1159_v4 = vpack.c.bf16 %v76_v1, %v75_v0  ;;  %v78_v5 = vld [vmem:[%s2557_s1 + $0x18] sm:$0xff]  ;;  %v59_v7 = vld [vmem:[%s2558_s0] sm:$0xff]  ;;  %v80_v10 = vld [vmem:[%s2557_s1 + $0x28] sm:$0xff]  ;;  %v346_v63 = vshrl.u32 %v345_v60, 7 }
   0x3   :  { %v1163_v6 = vpack.c.bf16 %v78_v5, %v77_v2  ;;  %v67_v8 = vld [vmem:[%s2558_s0 + $0x40] sm:$0xff]  ;;  %1135 = vmatprep.mubr.f32.mxu0 %v59_v7  ;;  %v283_v12 = vld [vmem:[%s2559_s3 + $0x10] sm:$0xff]  ;;  %v82_v15 = vld [vmem:[%s2557_s1 + $0x38] sm:$0xff] }
   0x4   :  { %1160 = vmatprep.subr.bf16.mxu0 %v1159_v4  ;;  %1191 = vmatprep.subr.bf16.mxu1 %v1159_v4  ;;  %v79_v9 = vld [vmem:[%s2557_s1 + $0x20] sm:$0xff]  ;;  %v81_v14 = vld [vmem:[%s2557_s1 + $0x30] sm:$0xff]  ;;  %v284_v16 = vld [vmem:[%s2559_s3 + $0x18] sm:$0xff]  ;;  %v347_v1 = vsub.s32 0, %v346_v63 }
   0x5   :  { %1162 = vmatpush3.bf16.xpose.msra.mxu0 %v1159_v4  ;;  %1199 = vmatpush3.bf16.xpose.msra.mxu1 %v1159_v4  ;;  %v1167_v11 = vpack.c.bf16 %v80_v10, %v79_v9  ;;  %v1348_v13 = vld [vmem:[%s2559_s3] sm:$0xff]  ;;  %v1363_v17 = vld [vmem:[%s2559_s3 + $0x8] sm:$0xff]  ;;  %v1171_v18 = vpack.c.bf16 %v82_v15, %v81_v14  ;;  %v288_v23 = vld [vmem:[%s2559_s3 + $0x38] sm:$0xff] }
   0x6   :  { %1164 = vmatprep.subr.bf16.mxu0 %v1163_v6  ;;  %1192 = vmatprep.subr.bf16.mxu1 %v1163_v6  ;;  %v286_v19 = vld [vmem:[%s2559_s3 + $0x28] sm:$0xff]  ;;  %v285_v20 = vld [vmem:[%s2559_s3 + $0x20] sm:$0xff]  ;;  %v287_v24 = vld [vmem:[%s2559_s3 + $0x30] sm:$0xff] }
   0x7   :  { %1147 = vmatprep.mubr.f32.mxu1 %v67_v8  ;;  %304 = vperm.xlu1 %1210, %v283_v12   ;;  %v83_v21 = vld [vmem:[%s2557_s1 + $0x40] sm:$0xff]  ;;  %v84_v22 = vld [vmem:[%s2557_s1 + $0x48] sm:$0xff]  ;;  %v85_v28 = vld [vmem:[%s2557_s1 + $0x50] sm:$0xff] }
   0x8   :  { %298 = vperm.xlu0 %1209, %v1348_v13   ;;  %v1175_v25 = vpack.c.bf16 %v84_v22, %v83_v21  ;;  %v1387_v26 = vld [vmem:[%s2559_s3 + $0x48] sm:$0xff]  ;;  %v1392_v27 = vld [vmem:[%s2559_s3 + $0x40] sm:$0xff]  ;;  %v86_v29 = vld [vmem:[%s2557_s1 + $0x58] sm:$0xff] }
   0x9   :  { %v292_v30 = vld [vmem:[%s2559_s3 + $0x58] sm:$0xff]  ;;  %v1408_v31 = vld [vmem:[%s2559_s3 + $0x50] sm:$0xff]  ;;  %v1179_v32 = vpack.c.bf16 %v86_v29, %v85_v28  ;;  %v294_v33 = vld [vmem:[%s2559_s3 + $0x68] sm:$0xff] }
   0xa   :  { %v293_v34 = vld [vmem:[%s2559_s3 + $0x60] sm:$0xff]  ;;  %v88_v36 = vld [vmem:[%s2557_s1 + $0x68] sm:$0xff]  ;;  %v296_v37 = vld [vmem:[%s2559_s3 + $0x78] sm:$0xff] }
   0xb   :  { %307 = vperm.xlu1 %1210, %v284_v16   ;;  %v87_v35 = vld [vmem:[%s2557_s1 + $0x60] sm:$0xff]  ;;  %v295_v38 = vld [vmem:[%s2559_s3 + $0x70] sm:$0xff]  ;;  %v90_v41 = vld [vmem:[%s2557_s1 + $0x78] sm:$0xff] }
   0xc   :  { %301 = vperm.xlu0 %1209, %v1363_v17   ;;  %v1183_v39 = vpack.c.bf16 %v88_v36, %v87_v35  ;;  %v89_v40 = vld [vmem:[%s2557_s1 + $0x70] sm:$0xff]  ;;  %v60_v43 = vld [vmem:[%s2558_s0 + $0x8] sm:$0xff]  ;;  %v62_v47 = vld [vmem:[%s2558_s0 + $0x18] sm:$0xff] }
   0xd   :  { %1166 = vmatpush3.bf16.xpose.msra.mxu0 %v1163_v6  ;;  %1200 = vmatpush3.bf16.xpose.msra.mxu1 %v1163_v6  ;;  %v1187_v42 = vpack.c.bf16 %v90_v41, %v89_v40  ;;  %v68_v44 = vld [vmem:[%s2558_s0 + $0x48] sm:$0xff]  ;;  %v61_v45 = vld [vmem:[%s2558_s0 + $0x10] sm:$0xff]  ;;  %v70_v48 = vld [vmem:[%s2558_s0 + $0x58] sm:$0xff] }
   0xe   :  { %1168 = vmatprep.subr.bf16.mxu0 %v1167_v11  ;;  %1193 = vmatprep.subr.bf16.mxu1 %v1167_v11  ;;  %v69_v46 = vld [vmem:[%s2558_s0 + $0x50] sm:$0xff]  ;;  %v63_v49 = vld [vmem:[%s2558_s0 + $0x20] sm:$0xff]  ;;  %v64_v51 = vld [vmem:[%s2558_s0 + $0x28] sm:$0xff] }
   0xf   :  { %313 = vperm.xlu1 %1210, %v286_v19   ;;  %v71_v50 = vld [vmem:[%s2558_s0 + $0x60] sm:$0xff]  ;;  %v72_v52 = vld [vmem:[%s2558_s0 + $0x68] sm:$0xff]  ;;  %v65_v53 = vld [vmem:[%s2558_s0 + $0x30] sm:$0xff] }
  0x10   :  { %310 = vperm.xlu0 %1209, %v285_v20   ;;  %v73_v54 = vld [vmem:[%s2558_s0 + $0x70] sm:$0xff]  ;;  %v66_v55 = vld [vmem:[%s2558_s0 + $0x38] sm:$0xff]  ;;  %v242_v2 = vld [vmem:[%s2560_s5] sm:$0x1] }
  0x11   :  { %v74_v56 = vld [vmem:[%s2558_s0 + $0x78] sm:$0xff]  ;;  %vm365_vm0 = vcmp.ge.s32.totalorder %v242_v2, 0  ;;  %v1488_v5 = vrot.slane %v242_v2, %v347_v1  ;;  %v1531_v16 = vld [vmem:[%s2561_s4] ss:$0 sm:$0xff]  ;;  %v2604_v2 = vmov 0 }
  0x12   :  { %v366_v7 = vsel %vm365_vm0, 1, %v1279_v3 }
  0x13   :  { %319 = vperm.xlu1 %1210, %v288_v23   ;;  %v1495_v9 = vrot.slane %v366_v7, %v347_v1 }
  0x14   :  { %316 = vperm.xlu0 %1209, %v287_v24  }
  0x15   :  { %1170 = vmatpush3.bf16.xpose.msra.mxu0 %v1167_v11  ;;  %1201 = vmatpush3.bf16.xpose.msra.mxu1 %v1167_v11  ;;  %vm371_vm9 = vcmp.eq.s32.totalorder %v1495_v9, 1 }
  0x16   :  { %1172 = vmatprep.subr.bf16.mxu0 %v1171_v18  ;;  %1194 = vmatprep.subr.bf16.mxu1 %v1171_v18 }
  0x17   :  { %325 = vperm.xlu1 %1210, %v1387_v26  }
  0x18   :  { %322 = vperm.xlu0 %1209, %v1392_v27  }
  0x1b   :  { %331 = vperm.xlu1 %1210, %v292_v30  }
  0x1c   :  { %328 = vperm.xlu0 %1209, %v1408_v31  }
  0x1d   :  { %1174 = vmatpush3.bf16.xpose.msra.mxu0 %v1171_v18  ;;  %1202 = vmatpush3.bf16.xpose.msra.mxu1 %v1171_v18 }
  0x1e   :  { %1176 = vmatprep.subr.bf16.mxu0 %v1175_v25  ;;  %1195 = vmatprep.subr.bf16.mxu1 %v1175_v25 }
  0x1f   :  { %337 = vperm.xlu1 %1210, %v294_v33  }
  0x20   :  { %334 = vperm.xlu0 %1209, %v293_v34  }
  0x23   :  { %343 = vperm.xlu1 %1210, %v296_v37  }
  0x24   :  { %340 = vperm.xlu0 %1209, %v295_v38  }
  0x25   :  { %1178 = vmatpush3.bf16.xpose.msra.mxu0 %v1175_v25  ;;  %1203 = vmatpush3.bf16.xpose.msra.mxu1 %v1175_v25 }
  0x26   :  { %1180 = vmatprep.subr.bf16.mxu0 %v1179_v32  ;;  %1196 = vmatprep.subr.bf16.mxu1 %v1179_v32 }
  0x2d   :  { %1182 = vmatpush3.bf16.xpose.msra.mxu0 %v1179_v32  ;;  %1204 = vmatpush3.bf16.xpose.msra.mxu1 %v1179_v32 }
  0x2e   :  { %1184 = vmatprep.subr.bf16.mxu0 %v1183_v39  ;;  %1197 = vmatprep.subr.bf16.mxu1 %v1183_v39 }
  0x35   :  { %1186 = vmatpush3.bf16.xpose.msra.mxu0 %v1183_v39  ;;  %1205 = vmatpush3.bf16.xpose.msra.mxu1 %v1183_v39 }
  0x36   :  { %1188 = vmatprep.subr.bf16.mxu0 %v1187_v42  ;;  %1198 = vmatprep.subr.bf16.mxu1 %v1187_v42 }
  0x3d   :  { %1190 = vmatpush3.bf16.xpose.msra.mxu0 %v1187_v42  ;;  %1206 = vmatpush3.bf16.xpose.msra.mxu1 %v1187_v42 }
  0x44   :  { %1136 = vmatmul.mubr.f32.vlgmr.msra.gmra.mrb[0].mxu0 %v60_v43  ;;  %1148 = vmatmul.mubr.f32.vlgmr.msra.gmra.mrb[0].mxu1 %v68_v44 }
  0x45   :  { %1138 = vmatprep.mubr.f32.mxu0 %v61_v45  ;;  %1150 = vmatprep.mubr.f32.mxu1 %v69_v46 }
  0x48   :  { %1139 = vmatmul.mubr.f32.gmra.mrb[2].mxu0 %v62_v47  ;;  %1151 = vmatmul.mubr.f32.gmra.mrb[2].mxu1 %v70_v48 }
  0x49   :  { %1141 = vmatprep.mubr.f32.mxu0 %v63_v49  ;;  %1153 = vmatprep.mubr.f32.mxu1 %v71_v50 }
  0x4c   :  { %1142 = vmatmul.mubr.f32.gmra.mrb[4].mxu0 %v64_v51  ;;  %1154 = vmatmul.mubr.f32.gmra.mrb[4].mxu1 %v72_v52 }
  0x4d   :  { %1144 = vmatprep.mubr.f32.mxu0 %v65_v53  ;;  %1156 = vmatprep.mubr.f32.mxu1 %v73_v54 }
  0x50   :  { %1145 = vmatmul.mubr.f32.gmra.mrb[6].mxu0 %v66_v55  ;;  %1157 = vmatmul.mubr.f32.gmra.mrb[6].mxu1 %v74_v56 }
  0x86   :  { %v1477_v57 = vpop.permute.xlu1 %304 }
  0x87   :  { %v299_v58 = vpop.permute.xlu0 %298  ;;  %vm2564_vm1 = vcmp.eq.s32.totalorder %v1477_v57, %v1488_v5 }
  0x88   :  { %vm349_vm2 = vcmp.eq.s32.totalorder %v299_v58, %v1488_v5  ;;  %vm1503_vm5 = vmxor %vm2564_vm1, %vm2566_vm4  ;;  %v2599_v58 = vmov 0 }
  0x89   :  { %vm404_vm7 = vmxor %vm349_vm2, %vm2566_vm4 }
  0x8a   :  { %v308_v59 = vpop.permute.xlu1 %307  ;;  %vm1537_vm13 = vmand %vm404_vm7, %vm371_vm9 }
  0x8b   :  { %v302_v61 = vpop.permute.xlu0 %301  ;;  %vm352_vm3 = vcmp.eq.s32.totalorder %v308_v59, %v1488_v5  ;;  %vm1559_vm0 = vmand %vm349_vm2, %vm371_vm9 }
  0x8c   :  { %vm350_vm6 = vcmp.eq.s32.totalorder %v302_v61, %v1488_v5  ;;  %vm1516_vm10 = vmxor %vm352_vm3, %vm2566_vm4 }
  0x8d   :  { %vm1524_vm11 = vmand %vm350_vm6, %vm371_vm9 }
  0x8e   :  { %v1479_v62 = vpop.permute.xlu1 %313  ;;  %vm1551_vm15 = vmxor %vm350_vm6, %vm2566_vm4 }
  0x8f   :  { %v1481_v0 = vpop.permute.xlu0 %310  ;;  %vm2565_vm12 = vcmp.eq.s32.totalorder %v1479_v62, %v1488_v5  ;;  %vm1604_vm6 = vmand %vm1551_vm15, %vm371_vm9 }
  0x90   :  { %vm1582_vm2 = vmxor %vm2565_vm12, %vm2566_vm4 }
  0x92   :  { %v1486_v4 = vpop.permute.xlu1 %319 }
  0x93   :  { %v1490_v6 = vpop.permute.xlu0 %316 }
  0x96   :  { %v326_v8 = vpop.permute.xlu1 %325 }
  0x97   :  { %v323_v3 = vpop.permute.xlu0 %322  ;;  %vm358_vm8 = vcmp.eq.s32.totalorder %v326_v8, %v1488_v5 }
  0x98   :  { %vm1544_vm14 = vmxor %vm358_vm8, %vm2566_vm4  ;;  %vm357_vm1 = vcmp.eq.s32.totalorder %v323_v3, %v1488_v5 }
  0x99   :  { %vm1567_vm7 = vmand %vm358_vm8, %vm371_vm9 }
  0x9a   :  { %v332_v12 = vpop.permute.xlu1 %331  ;;  %vm1590_vm8 = vmand %vm1544_vm14, %vm371_vm9 }
  0x9b   :  { %v1572_v33 = vpop.permute.xlu0 %328  ;;  %vm1615_vm14 = vmand %vm352_vm3, %vm371_vm9  ;;  %vm2592_vm15 = vcmp.eq.s32.totalorder %v332_v12, %v1488_v5 }
  0x9c   :  { %vm1622_vm12 = vmxor %vm2592_vm15, %vm2566_vm4 }
  0x9d   :  { %vm1655_vm15 = vmand %vm1516_vm10, %vm371_vm9 }
  0x9e   :  { %v338_v51 = vpop.permute.xlu1 %337  ;;  %v2600_v58 = vsel %vm1655_vm15, 4294967295, %v2599_v58 }
  0xa2   :  { %v344_v7 = vpop.permute.xlu1 %343 }
 0x117   :  { %v1137_v15 = vpop.f32.mrb[0].mxu0  ;;  %v1149_v18 = vpop.f32.mrb[0].mxu1 }
 0x118   :  { %v244_v21 = vmul.f32 2.0, %v1137_v15  ;;  %v252_v22 = vmul.f32 2.0, %v1149_v18  ;;  %v157_v23 = vpop.f32.mrb[1].mxu0  ;;  %v197_v24 = vpop.f32.mrb[1].mxu1 }
 0x119   :  { %v243_v28 = vmul.f32 2.0, %v157_v23  ;;  %v251_v29 = vmul.f32 2.0, %v197_v24  ;;  %v335_v23 = vpop.permute.xlu0 %334 }
 0x11a   :  { %v266_v34 = vsub.f32 %v1531_v16, %v244_v21  ;;  %v1576_v35 = vsub.f32 %v1531_v16, %v252_v22 }
 0x11b   :  { %v1596_v38 = vsub.f32 %v1531_v16, %v251_v29  ;;  %v1140_v39 = vpop.f32.mrb[2].mxu0  ;;  %v1152_v40 = vpop.f32.mrb[2].mxu1  ;;  %v1627_v47 = vsub.f32 %v1531_v16, %v243_v28 }
 0x11c   :  { %v167_v42 = vpop.f32.mrb[3].mxu0  ;;  %v207_v43 = vpop.f32.mrb[3].mxu1  ;;  %v397_v44 = vsel %vm1567_vm7, %v1576_v35, -1e+30  ;;  %v389_v50 = vsel %vm1524_vm11, %v266_v34, -1e+30  ;;  %vm1637_vm7 = vmand %vm357_vm1, %vm371_vm9 }
 0x11d   :  { %v253_v48 = vmul.f32 2.0, %v207_v43  ;;  %v493_v49 = vmax.f32 %v397_v44, -1e+30  ;;  %v246_v53 = vmul.f32 2.0, %v1140_v39  ;;  %v485_v54 = vmax.f32 %v389_v50, -1e+30  ;;  %vm1647_vm11 = vmand %vm1503_vm5, %vm371_vm9 }
 0x11e   :  { %v437_v55 = vsel %vm1604_vm6, %v266_v34, 1e+30  ;;  %vm1662_vm6 = vmxor %vm357_vm1, %vm2566_vm4  ;;  %v254_v60 = vmul.f32 2.0, %v1152_v40  ;;  %v396_v1 = vsel %vm1637_vm7, %v1596_v38, -1e+30  ;;  %vm2603_vm5 = vcmp.eq.s32.totalorder %v1486_v4, %v1488_v5 }
 0x11f   :  { %601 = vmax.xlane.f32.xlu0 %v493_v49  ;;  %v1155_v61 = vpop.f32.mrb[4].mxu1  ;;  %v1143_v63 = vpop.f32.mrb[4].mxu0  ;;  %vm1673_vm10 = vmxor %vm2603_vm5, %vm2566_vm4  ;;  %vm2606_vm1 = vcmp.eq.s32.totalorder %v332_v12, %v1488_v5  ;;  %v245_v8 = vmul.f32 2.0, %v167_v42  ;;  %585 = vmax.xlane.f32.xlu1 %v485_v54  ;;  %v1714_v15 = vsub.f32 %v1531_v16, %v253_v48  ;;  %v501_v18 = vmin.f32 %v437_v55, 1e+30 }
 0x120   :  { %v2605_v2 = vsel %vm1673_vm10, 4294967295, %v2604_v2  ;;  %vm1681_vm3 = vmand %vm2606_vm1, %vm371_vm9  ;;  %v177_v10 = vpop.f32.mrb[5].mxu0  ;;  %v217_v3 = vpop.f32.mrb[5].mxu1  ;;  %vm2611_vm1 = vcmp.eq.s32.totalorder %v1481_v0, %v1488_v5  ;;  %v445_v20 = vsel %vm1590_vm8, %v1576_v35, 1e+30  ;;  %v1740_v19 = vsub.f32 %v1531_v16, %v246_v53 }
 0x121   :  { %vm1692_vm5 = vmand %vm1622_vm12, %vm371_vm9  ;;  %v436_v21 = vsel %vm1537_vm13, %v1627_v47, 1e+30  ;;  %vm2617_vm12 = vcmp.eq.s32.totalorder %v1477_v57, %v1488_v5  ;;  %v248_v24 = vmul.f32 2.0, %v1143_v63  ;;  %v247_v25 = vmul.f32 2.0, %v177_v10 }
 0x122   :  { %vm1701_vm15 = vmand %vm2611_vm1, %vm371_vm9  ;;  %v492_v28 = vmax.f32 %v396_v1, -1e+30  ;;  %vm2622_vm13 = vcmp.eq.s32.totalorder %v1479_v62, %v1488_v5  ;;  %v2623_v57 = vmov 0  ;;  %v1759_v32 = vsub.f32 %v1531_v16, %v254_v60 }
 0x123   :  { %vm2614_vm7 = vmmov %vm2611_vm1  ;;  %v1158_v34 = vpop.f32.mrb[6].mxu1  ;;  %649 = vmin.xlane.f32.xlu0 %v501_v18  ;;  %v1146_v35 = vpop.f32.mrb[6].mxu0  ;;  %v388_v37 = vsel %vm1559_vm0, %v1627_v47, -1e+30  ;;  %v2628_v39 = vmov 0  ;;  %v1785_v30 = vsub.f32 %v1531_v16, %v245_v8  ;;  %vm2637_vm0 = vcmp.eq.s32.totalorder %v338_v51, %v1488_v5  ;;  %v560_v8 = vld [vmem:[%s2562_s2 + $0x48] sm:$0xff] }
 0x124   :  { %vm1709_vm10 = vmxor %vm2614_vm7, %vm2566_vm4  ;;  %599 = vmax.xlane.f32.xlu1 %v492_v28  ;;  %v187_v41 = vpop.f32.mrb[7].mxu0  ;;  %v227_v42 = vpop.f32.mrb[7].mxu1  ;;  %v509_v43 = vmin.f32 %v445_v20, 1e+30  ;;  %v256_v47 = vmul.f32 2.0, %v1155_v61  ;;  %v1813_v48 = vsub.f32 %v1531_v16, %v247_v25  ;;  %v258_v11 = vmul.f32 2.0, %v1158_v34 }
 0x125   :  { %vm1727_vm7 = vmand %vm2617_vm12, %vm371_vm9  ;;  %v500_v49 = vmin.f32 %v436_v21, 1e+30  ;;  %v391_v36 = vsel %vm1615_vm14, %v1740_v19, -1e+30  ;;  %v399_v52 = vsel %vm1681_vm3, %v1759_v32, -1e+30  ;;  %vm2645_vm3 = vcmp.eq.s32.totalorder %v1486_v4, %v1488_v5  ;;  %v341_v61 = vpop.permute.xlu0 %340 }
 0x126   :  { %vm1735_vm1 = vmand %vm1662_vm6, %vm371_vm9  ;;  %vm2625_vm6 = vcmp.eq.s32.totalorder %v338_v51, %v1488_v5  ;;  %v1828_v51 = vsub.f32 %v1531_v16, %v248_v24  ;;  %v249_v54 = vmul.f32 2.0, %v187_v41  ;;  %v438_v55 = vsel %vm1647_vm11, %v1785_v30, 1e+30 }
 0x127   :  { %vm1747_vm8 = vmand %vm2622_vm13, %vm371_vm9  ;;  %v444_v62 = vsel %vm1735_vm1, %v1596_v38, 1e+30  ;;  %v255_v38 = vmul.f32 2.0, %v217_v3  ;;  %665 = vmin.xlane.f32.xlu0 %v509_v43  ;;  %v257_v63 = vmul.f32 2.0, %v227_v42  ;;  %v484_v1 = vmax.f32 %v388_v37, -1e+30 }
 0x128   :  { %v2624_v57 = vsel %vm1747_vm8, 4294967295, %v2623_v57  ;;  %vm1754_vm12 = vmxor %vm2625_vm6, %vm2566_vm4  ;;  %vm2630_vm6 = vcmp.eq.s32.totalorder %v1572_v33, %v1488_v5  ;;  %647 = vmin.xlane.f32.xlu1 %v500_v49  ;;  %v1876_v10 = vsub.f32 %v1531_v16, %v256_v47  ;;  %v508_v3 = vmin.f32 %v444_v62, 1e+30 }
 0x129   :  { %vm1771_vm13 = vmand %vm1709_vm10, %vm371_vm9  ;;  %vm2633_vm10 = vmmov 1   ;;  %v1840_v53 = vsub.f32 %v1531_v16, %v255_v38  ;;  %v447_v14 = vsel %vm1692_vm5, %v1759_v32, 1e+30  ;;  %v390_v12 = vsel %vm1727_vm7, %v1785_v30, -1e+30  ;;  %v2052_v30 = vld [vmem:[%s2562_s2 + $0x50] sm:$0xff] }
 0x12a   :  { %v2629_v39 = vsel %vm1771_vm13, 4294967295, %v2628_v39  ;;  %vm1780_vm4 = vmand %vm2630_vm6, %vm371_vm9  ;;  %v1914_v21 = vsub.f32 %v1531_v16, %v249_v54  ;;  %vm2661_vm7 = vnez %v2624_v57  ;;  %v502_v38 = vmin.f32 %v438_v55, 1e+30 }
 0x12b   :  { %vm2634_vm1 = vmmov %vm2630_vm6  ;;  %v398_v44 = vsel %vm1780_vm4, %v1714_v15, -1e+30  ;;  %583 = vmax.xlane.f32.xlu0 %v484_v1  ;;  %v393_v22 = vsel %vm2661_vm7, %v1828_v51, -1e+30  ;;  %v511_v9 = vmin.f32 %v447_v14, 1e+30 }
 0x12c   :  { %vm414_vm13 = vmxor %vm2634_vm1, %vm2633_vm10  ;;  %663 = vmin.xlane.f32.xlu1 %v508_v3  ;;  %v494_v57 = vmax.f32 %v398_v44, -1e+30  ;;  %v486_v50 = vmax.f32 %v390_v12, -1e+30 }
 0x12d   :  { %vm1800_vm6 = vmand %vm1582_vm2, %vm371_vm9  ;;  %vm361_vm2 = vcmp.eq.s32.totalorder %v335_v23, %v1488_v5  ;;  %v1932_v23 = vsub.f32 %v1531_v16, %v257_v63 }
 0x12e   :  { %vm1808_vm8 = vmand %vm2637_vm0, %vm371_vm9  ;;  %vm2648_vm0 = vcmp.eq.s32.totalorder %v1490_v6, %v1488_v5  ;;  %v441_v62 = vsel %vm1800_vm6, %v1828_v51, 1e+30  ;;  %v551_v6 = vld [vmem:[%s2562_s2] sm:$0xff] }
 0x12f   :  { %vm1822_vm4 = vmand %vm1754_vm12, %vm371_vm9  ;;  %vm2644_vm12 = vnez %v2600_v58  ;;  %v250_v58 = vmul.f32 2.0, %v1146_v35  ;;  %v401_v29 = vsel %vm1808_vm8, %v1876_v10, -1e+30  ;;  %v280_v35 = vsub.f32 %v1531_v16, %v258_v11 }
 0x130   :  { %vm1835_vm14 = vmand %vm414_vm13, %vm371_vm9  ;;  %v439_v59 = vsel %vm2644_vm12, %v1740_v19, 1e+30  ;;  %v487_v19 = vmax.f32 %v391_v36, -1e+30  ;;  %603 = vmax.xlane.f32.xlu1 %v494_v57  ;;  %v505_v55 = vmin.f32 %v441_v62, 1e+30 }
 0x131   :  { %vm1853_vm13 = vmand %vm2645_vm3, %vm371_vm9  ;;  %v446_v4 = vsel %vm1835_vm14, %v1714_v15, 1e+30  ;;  %v392_v15 = vsel %vm1701_vm15, %v1813_v48, -1e+30  ;;  %vm2653_vm14 = vnez %v2605_v2  ;;  %v1946_v28 = vsub.f32 %v1531_v16, %v250_v58  ;;  %v559_v2 = vld [vmem:[%s2562_s2 + $0x40] sm:$0xff] }
 0x132   :  { %vm1861_vm1 = vmxor %vm2648_vm0, %vm2633_vm10  ;;  %589 = vmax.xlane.f32.xlu0 %v487_v19  ;;  %v495_v16 = vmax.f32 %v399_v52, -1e+30  ;;  %v503_v47 = vmin.f32 %v439_v59, 1e+30  ;;  %v510_v49 = vmin.f32 %v446_v4, 1e+30 }
 0x133   :  { %vm1871_vm11 = vmxor %vm361_vm2, %vm2633_vm10  ;;  %v395_v41 = vsel %vm1853_vm13, %v1946_v28, -1e+30  ;;  %v488_v36 = vmax.f32 %v392_v15, -1e+30  ;;  %v489_v52 = vmax.f32 %v393_v22, -1e+30 }
 0x134   :  { %vm1888_vm12 = vmand %vm2653_vm14, %vm371_vm9  ;;  %651 = vmin.xlane.f32.xlu1 %v502_v38  ;;  %v2057_v38 = vld [vmem:[%s2562_s2 + $0x18] sm:$0xff] }
 0x135   :  { %vm1896_vm3 = vmand %vm361_vm2, %vm371_vm9  ;;  %vm363_vm2 = vcmp.eq.s32.totalorder %v341_v61, %v1488_v5  ;;  %v443_v33 = vsel %vm1888_vm12, %v1946_v28, 1e+30  ;;  %v491_v61 = vmax.f32 %v395_v41, -1e+30 }
 0x136   :  { %vm2658_vm15 = vmmov %vm2648_vm0  ;;  %v400_v0 = vsel %vm1896_vm3, %v1840_v53, -1e+30  ;;  %vm364_vm0 = vcmp.eq.s32.totalorder %v344_v7, %v1488_v5  ;;  %vm2664_vm3 = vnez %v2629_v39  ;;  %v449_v39 = vsel %vm1822_vm4, %v1876_v10, 1e+30  ;;  %605 = vmax.xlane.f32.xlu0 %v495_v16  ;;  %v552_v10 = vld [vmem:[%s2562_s2 + $0x8] sm:$0xff] }
 0x137   :  { %vm1908_vm5 = vmand %vm2658_vm15, %vm371_vm9  ;;  %v440_v24 = vsel %vm2664_vm3, %v1813_v48, 1e+30  ;;  %v496_v51 = vmax.f32 %v400_v0, -1e+30  ;;  %v513_v60 = vmin.f32 %v449_v39, 1e+30 }
 0x138   :  { %vm1927_vm14 = vmand %vm1871_vm11, %vm371_vm9  ;;  %v394_v37 = vsel %vm1908_vm5, %v1914_v21, -1e+30  ;;  %667 = vmin.xlane.f32.xlu1 %v510_v49  ;;  %v504_v45 = vmin.f32 %v440_v24, 1e+30  ;;  %v507_v4 = vmin.f32 %v443_v33, 1e+30 }
 0x139   :  { %vm1941_vm15 = vmand %vm1861_vm1, %vm371_vm9  ;;  %v448_v32 = vsel %vm1927_vm14, %v1840_v53, 1e+30  ;;  %v497_v53 = vmax.f32 %v401_v29, -1e+30  ;;  %v490_v59 = vmax.f32 %v394_v37, -1e+30 }
 0x13a   :  { %vm1958_vm1 = vmand %vm363_vm2, %vm371_vm9  ;;  %v442_v42 = vsel %vm1941_vm15, %v1914_v21, 1e+30  ;;  %653 = vmin.xlane.f32.xlu0 %v503_v47  ;;  %v512_v54 = vmin.f32 %v448_v32, 1e+30 }
 0x13b   :  { %vm418_vm8 = vmxor %vm363_vm2, %vm2633_vm10  ;;  %v402_v40 = vsel %vm1958_vm1, %v1932_v23, -1e+30  ;;  %v506_v58 = vmin.f32 %v442_v42, 1e+30  ;;  %vm1047_vm1 = vcmask 7168  }
 0x13c   :  { %vm419_vm11 = vmxor %vm364_vm0, %vm2633_vm10  ;;  %591 = vmax.xlane.f32.xlu1 %v488_v36  ;;  %v498_v56 = vmax.f32 %v402_v40, -1e+30  ;;  %v2082_v36 = vld [vmem:[%s2562_s2 + $0x58] sm:$0xff] }
 0x13d   :  { %vm1985_vm6 = vmand %vm364_vm0, %vm371_vm9  ;;  %vm1016_vm0 = vcmp.ge.s32.totalorder %v1363_v17, 0 }
 0x13e   :  { %vm1997_vm10 = vmand %vm418_vm8, %vm371_vm9  ;;  %v403_v5 = vsel %vm1985_vm6, %v280_v35, -1e+30  ;;  %669 = vmin.xlane.f32.xlu0 %v511_v9 }
 0x13f   :  { %vm2005_vm4 = vmand %vm419_vm11, %vm371_vm9  ;;  %v450_v46 = vsel %vm1997_vm10, %v1932_v23, 1e+30  ;;  %v499_v63 = vmax.f32 %v403_v5, -1e+30 }
 0x140   :  { %v451_v48 = vsel %vm2005_vm4, %v280_v35, 1e+30  ;;  %607 = vmax.xlane.f32.xlu1 %v496_v51  ;;  %v514_v1 = vmin.f32 %v450_v46, 1e+30  ;;  %vm1024_vm4 = vcmp.ge.s32.totalorder %v1387_v26, 0 }
 0x141   :  { %v515_v7 = vmin.f32 %v451_v48, 1e+30 }
 0x142   :  { %587 = vmax.xlane.f32.xlu0 %v486_v50 }
 0x144   :  { %655 = vmin.xlane.f32.xlu1 %v504_v45 }
 0x146   :  { %593 = vmax.xlane.f32.xlu0 %v489_v52 }
 0x148   :  { %671 = vmin.xlane.f32.xlu1 %v512_v54 }
 0x14a   :  { %609 = vmax.xlane.f32.xlu0 %v497_v53 }
 0x14c   :  { %595 = vmax.xlane.f32.xlu1 %v490_v59 }
 0x14e   :  { %657 = vmin.xlane.f32.xlu0 %v505_v55 }
 0x150   :  { %611 = vmax.xlane.f32.xlu1 %v498_v56 }
 0x152   :  { %673 = vmin.xlane.f32.xlu0 %v513_v60  ;;  %v2099_v60 = vld [vmem:[%s2562_s2 + $0x10] sm:$0xff] }
 0x154   :  { %659 = vmin.xlane.f32.xlu1 %v506_v58 }
 0x156   :  { %597 = vmax.xlane.f32.xlu0 %v491_v61 }
 0x158   :  { %675 = vmin.xlane.f32.xlu1 %v514_v1 }
 0x15a   :  { %613 = vmax.xlane.f32.xlu0 %v499_v63 }
 0x15e   :  { %661 = vmin.xlane.f32.xlu0 %v507_v4 }
 0x162   :  { %677 = vmin.xlane.f32.xlu0 %v515_v7 }
 0x1ac   :  { %v602_v3 = vpop.xlane.xlu0 %601  ;;  %v586_v15 = vpop.xlane.xlu1 %585 }
 0x1ad   :  { %v624_v14 = vadd.f32 %v602_v3, %v560_v8  ;;  %v616_v18 = vadd.f32 %v586_v15, %v552_v10 }
 0x1af   :  { %v2023_v20 = vmax.f32 %v624_v14, 1e-12  ;;  %v2025_v11 = vmax.f32 %v616_v18, 1e-12 }
 0x1b0   :  { %v650_v12 = vpop.xlane.xlu0 %649 }
 0x1b1   :  { %1211 = vrsqrt.f32 %v2023_v20  ;;  %v600_v21 = vpop.xlane.xlu1 %599  ;;  %v680_v0 = vadd.f32 %v650_v12, %v552_v10  ;;  %vm776_vm9 = vcmp.eq.f32.partialorder %v2023_v20, inf  ;;  %vm778_vm13 = vcmp.eq.f32.partialorder %v2023_v20, 0.0 }
 0x1b2   :  { %1213 = vrsqrt.f32 %v2025_v11  ;;  %v623_v22 = vadd.f32 %v600_v21, %v559_v2  ;;  %v779_v42 = vand.u32 2147483648, %v2023_v20  ;;  %vm720_vm12 = vcmp.eq.f32.partialorder %v2025_v11, inf }
 0x1b3   :  { %v2035_v19 = vmax.f32 %v680_v0, 1e-12  ;;  %vm722_vm5 = vcmp.eq.f32.partialorder %v2025_v11, 0.0  ;;  %v723_v33 = vand.u32 2147483648, %v2025_v11 }
 0x1b4   :  { %v666_v23 = vpop.xlane.xlu0 %665  ;;  %v2037_v24 = vmax.f32 %v623_v22, 1e-12 }
 0x1b5   :  { %v688_v25 = vadd.f32 %v666_v23, %v560_v8  ;;  %v648_v28 = vpop.xlane.xlu1 %647  ;;  %1215 = vrsqrt.f32 %v2035_v19  ;;  %vm848_vm2 = vcmp.eq.f32.partialorder %v2035_v19, inf  ;;  %vm850_vm7 = vcmp.eq.f32.partialorder %v2035_v19, 0.0 }
 0x1b6   :  { %v679_v57 = vadd.f32 %v648_v28, %v551_v6  ;;  %1217 = vrsqrt.f32 %v2037_v24  ;;  %v851_v49 = vand.u32 2147483648, %v2035_v19  ;;  %vm769_vm14 = vcmp.eq.f32.partialorder %v2037_v24, inf }
 0x1b7   :  { %v2041_v32 = vmax.f32 %v688_v25, 1e-12  ;;  %v772_v52 = vand.u32 2147483648, %v2037_v24  ;;  %vm771_vm8 = vcmp.eq.f32.partialorder %v2037_v24, 0.0 }
 0x1b8   :  { %v584_v29 = vpop.xlane.xlu0 %583  ;;  %v2043_v34 = vmax.f32 %v679_v57, 1e-12 }
 0x1b9   :  { %v664_v35 = vpop.xlane.xlu1 %663  ;;  %v615_v62 = vadd.f32 %v584_v29, %v551_v6  ;;  %1219 = vrsqrt.f32 %v2041_v32  ;;  %vm904_vm3 = vcmp.eq.f32.partialorder %v2041_v32, inf  ;;  %vm906_vm15 = vcmp.eq.f32.partialorder %v2041_v32, 0.0 }
 0x1ba   :  { %v687_v37 = vadd.f32 %v664_v35, %v559_v2  ;;  %1221 = vrsqrt.f32 %v2043_v34  ;;  %v907_v59 = vand.u32 2147483648, %v2041_v32  ;;  %vm841_vm11 = vcmp.eq.f32.partialorder %v2043_v34, inf }
 0x1bb   :  { %v1212_v39 = vpop.eup %1211  ;;  %v2063_v5 = vmax.f32 %v615_v62, 1e-12  ;;  %vm843_vm6 = vcmp.eq.f32.partialorder %v2043_v34, 0.0  ;;  %v844_v61 = vand.u32 2147483648, %v2043_v34 }
 0x1bc   :  { %v1214_v16 = vpop.eup %1213  ;;  %v775_v40 = vmul.f32 %v1212_v39, %v2023_v20  ;;  %v2061_v43 = vmax.f32 %v687_v37, 1e-12 }
 0x1bd   :  { %v604_v44 = vpop.xlane.xlu1 %603  ;;  %v719_v46 = vmul.f32 %v1214_v16, %v2025_v11 }
 0x1be   :  { %1223 = vrsqrt.f32 %v2061_v43  ;;  %v625_v47 = vadd.f32 %v604_v44, %v2052_v30  ;;  %v777_v48 = vsel %vm776_vm9, %v2023_v20, %v775_v40  ;;  %vm897_vm10 = vcmp.eq.f32.partialorder %v2061_v43, inf }
 0x1bf   :  { %v590_v41 = vpop.xlane.xlu0 %589  ;;  %1225 = vrsqrt.f32 %v2063_v5  ;;  %v1216_v51 = vpop.eup %1215  ;;  %v721_v54 = vsel %vm720_vm12, %v2025_v11, %v719_v46  ;;  %v780_v56 = vsel %vm778_vm13, %v779_v42, %v777_v48  ;;  %vm899_vm9 = vcmp.eq.f32.partialorder %v2061_v43, 0.0 }
 0x1c0   :  { %v618_v9 = vadd.f32 %v590_v41, %v2057_v38  ;;  %v1218_v53 = vpop.eup %1217  ;;  %v847_v55 = vmul.f32 %v1216_v51, %v2035_v19  ;;  %v2105_v58 = vmax.f32 %v625_v47, 1e-12  ;;  %v724_v3 = vsel %vm722_vm5, %v723_v33, %v721_v54 }
 0x1c1   :  { %v652_v45 = vpop.xlane.xlu1 %651  ;;  %v768_v4 = vmul.f32 %v1218_v53, %v2037_v24  ;;  %v900_v21 = vand.u32 2147483648, %v2061_v43  ;;  %vm713_vm13 = vcmp.eq.f32.partialorder %v2063_v5, inf  ;;  %vm715_vm12 = vcmp.eq.f32.partialorder %v2063_v5, 0.0 }
 0x1c2   :  { %v849_v1 = vsel %vm848_vm2, %v2035_v19, %v847_v55  ;;  %v2113_v7 = vmax.f32 %v618_v9, 1e-12  ;;  %v681_v15 = vadd.f32 %v652_v45, %v2099_v60  ;;  %1227 = vrsqrt.f32 %v2105_v58  ;;  %v555_v55 = vld [vmem:[%s2562_s2 + $0x20] sm:$0xff] }
 0x1c3   :  { %v606_v50 = vpop.xlane.xlu0 %605  ;;  %v1220_v10 = vpop.eup %1219  ;;  %v852_v14 = vsel %vm850_vm7, %v851_v49, %v849_v1  ;;  %v770_v6 = vsel %vm769_vm14, %v2037_v24, %v768_v4  ;;  %v716_v44 = vand.u32 2147483648, %v2063_v5  ;;  %vm1023_vm5 = vcmp.ge.s32.totalorder %v1392_v27, 0  ;;  %v2194_v27 = vld [vmem:[%s2562_s2 + $0x60] sm:$0xff] }
 0x1c4   :  { %v626_v63 = vadd.f32 %v606_v50, %v2082_v36  ;;  %v1222_v20 = vpop.eup %1221  ;;  %v952_v12 = vsub.f32 %v724_v3, %v852_v14  ;;  %v903_v2 = vmul.f32 %v1220_v10, %v2041_v32  ;;  %1229 = vrsqrt.f32 %v2113_v7 }
 0x1c5   :  { %v668_v18 = vpop.xlane.xlu1 %667  ;;  %v840_v11 = vmul.f32 %v1222_v20, %v2043_v34  ;;  %v2142_v29 = vmax.f32 %v681_v15, 1e-12  ;;  %vm1015_vm2 = vcmp.ge.s32.totalorder %v1348_v13, 0  ;;  %vm783_vm7 = vcmp.eq.f32.partialorder %v2105_v58, inf }
 0x1c6   :  { %v2128_v0 = vmax.f32 %v626_v63, 1e-12  ;;  %v968_v22 = vadd.f32 0.3, %v952_v12  ;;  %v905_v23 = vsel %vm904_vm3, %v2041_v32, %v903_v2  ;;  %v689_v40 = vadd.f32 %v668_v18, %v2052_v30 }
 0x1c7   :  { %v654_v8 = vpop.xlane.xlu0 %653  ;;  %v908_v28 = vsel %vm906_vm15, %v907_v59, %v905_v23  ;;  %v842_v57 = vsel %vm841_vm11, %v2043_v34, %v840_v11  ;;  %v773_v32 = vsel %vm771_vm8, %v772_v52, %v770_v6  ;;  %vm734_vm14 = vcmp.eq.f32.partialorder %v2113_v7, inf }
 0x1c8   :  { %v1224_v25 = vpop.eup %1223  ;;  %v682_v35 = vadd.f32 %v654_v8, %v2057_v38  ;;  %v984_v37 = vmax.f32 %v968_v22, 0.0  ;;  %v960_v39 = vsub.f32 %v780_v56, %v908_v28  ;;  %1231 = vrsqrt.f32 %v2128_v0  ;;  %v2201_v8 = vld [vmem:[%s2562_s2 + $0x28] sm:$0xff] }
 0x1c9   :  { %v1226_v62 = vpop.eup %1225  ;;  %v896_v16 = vmul.f32 %v1224_v25, %v2061_v43  ;;  %v592_v41 = vpop.xlane.xlu1 %591  ;;  %v845_v33 = vsel %vm843_vm6, %v844_v61, %v842_v57  ;;  %1233 = vrsqrt.f32 %v2142_v29  ;;  %v2173_v50 = vmax.f32 %v689_v40, 1e-12  ;;  %v1275_v57 = vld [vmem:[%s2559_s3 + $0x18] sm:$0xff] }
 0x1ca   :  { %v712_v42 = vmul.f32 %v1226_v62, %v2063_v5  ;;  %v1032_v38 = vsel %vm1016_vm0, %v984_v37, 0.0  ;;  %v976_v46 = vadd.f32 0.3, %v960_v39  ;;  %v2169_v34 = vmax.f32 %v682_v35, 1e-12 }
 0x1cb   :  { %v670_v19 = vpop.xlane.xlu0 %669  ;;  %v898_v30 = vsel %vm897_vm10, %v2061_v43, %v896_v16  ;;  %1049 = vst.msk [vmem:[%s2563_s6 + $0x8] sm:$0xff] %vm1047_vm1, %v1032_v38  ;;  %vm785_vm0 = vcmp.eq.f32.partialorder %v2105_v58, 0.0  ;;  %v786_v61 = vand.u32 2147483648, %v2105_v58  ;;  %v619_v4 = vadd.f32 %v592_v41, %v555_v55 }
 0x1cc   :  { %v901_v24 = vsel %vm899_vm9, %v900_v21, %v898_v30  ;;  %v714_v17 = vsel %vm713_vm13, %v2063_v5, %v712_v42  ;;  %v992_v48 = vmax.f32 %v976_v46, 0.0  ;;  %1235 = vrsqrt.f32 %v2169_v34  ;;  %v1228_v54 = vpop.eup %1227 }
 0x1cd   :  { %v959_v49 = vsub.f32 %v773_v32, %v901_v24  ;;  %v717_v9 = vsel %vm715_vm12, %v716_v44, %v714_v17  ;;  %v608_v45 = vpop.xlane.xlu1 %607  ;;  %1237 = vrsqrt.f32 %v2173_v50  ;;  %v690_v1 = vadd.f32 %v670_v19, %v2082_v36 }
 0x1ce   :  { %v951_v51 = vsub.f32 %v717_v9, %v845_v33  ;;  %v1040_v43 = vsel %vm1024_vm4, %v992_v48, 0.0  ;;  %v1230_v59 = vpop.eup %1229  ;;  %v782_v14 = vmul.f32 %v1228_v54, %v2105_v58  ;;  %vm736_vm3 = vcmp.eq.f32.partialorder %v2113_v7, 0.0 }
 0x1cf   :  { %v588_v47 = vpop.xlane.xlu0 %587  ;;  %v975_v52 = vadd.f32 0.3, %v959_v49  ;;  %1057 = vst.msk [vmem:[%s2563_s6 + $0x48] sm:$0xff] %vm1047_vm1, %v1040_v43  ;;  %v733_v15 = vmul.f32 %v1230_v59, %v2113_v7  ;;  %v2215_v36 = vmax.f32 %v690_v1, 1e-12  ;;  %v627_v18 = vadd.f32 %v608_v45, %v2194_v27 }
 0x1d0   :  { %v967_v5 = vadd.f32 0.3, %v951_v51  ;;  %v617_v13 = vadd.f32 %v588_v47, %v2099_v60  ;;  %v2217_v60 = vmax.f32 %v619_v4, 1e-12  ;;  %v737_v21 = vand.u32 2147483648, %v2113_v7 }
 0x1d1   :  { %v991_v56 = vmax.f32 %v975_v52, 0.0  ;;  %v656_v20 = vpop.xlane.xlu1 %655  ;;  %vm790_vm15 = vcmp.eq.f32.partialorder %v2128_v0, inf  ;;  %vm792_vm8 = vcmp.eq.f32.partialorder %v2128_v0, 0.0  ;;  %v793_v6 = vand.u32 2147483648, %v2128_v0 }
 0x1d2   :  { %v983_v26 = vmax.f32 %v967_v5, 0.0  ;;  %v1232_v10 = vpop.eup %1231  ;;  %v2222_v11 = vmax.f32 %v617_v13, 1e-12  ;;  %vm855_vm11 = vcmp.eq.f32.partialorder %v2142_v29, inf  ;;  %vm862_vm6 = vcmp.eq.f32.partialorder %v2169_v34, inf  ;;  %v2289_v5 = vld [vmem:[%s2559_s3 + $0x58] sm:$0xff] }
 0x1d3   :  { %v594_v53 = vpop.xlane.xlu0 %593  ;;  %v1039_v63 = vsel %vm1023_vm5, %v991_v56, 0.0  ;;  %v1234_v2 = vpop.eup %1233  ;;  %1239 = vrsqrt.f32 %v2215_v36  ;;  %v784_v19 = vsel %vm783_vm7, %v2105_v58, %v782_v14  ;;  %v735_v25 = vsel %vm734_vm14, %v2113_v7, %v733_v15  ;;  %v2266_v7 = vld [vmem:[%s2562_s2 + $0x68] sm:$0xff] }
 0x1d4   :  { %1056 = vst.msk [vmem:[%s2563_s6 + $0x40] sm:$0xff] %vm1047_vm1, %v1039_v63  ;;  %v1031_v3 = vsel %vm1015_vm2, %v983_v26, 0.0  ;;  %v620_v22 = vadd.f32 %v594_v53, %v2201_v8  ;;  %v789_v28 = vmul.f32 %v1232_v10, %v2128_v0  ;;  %vm1018_vm10 = vcmp.ge.s32.totalorder %v1275_v57, 0 }
 0x1d5   :  { %1048 = vst.msk [vmem:[%s2563_s6] sm:$0xff] %vm1047_vm1, %v1031_v3  ;;  %1241 = vrsqrt.f32 %v2217_v60  ;;  %vm857_vm4 = vcmp.eq.f32.partialorder %v2142_v29, 0.0  ;;  %v2244_v62 = vmax.f32 %v627_v18, 1e-12  ;;  %v683_v37 = vadd.f32 %v656_v20, %v555_v55  ;;  %v672_v38 = vpop.xlane.xlu1 %671 }
 0x1d6   :  { %v1236_v23 = vpop.eup %1235  ;;  %1243 = vrsqrt.f32 %v2222_v11  ;;  %v854_v39 = vmul.f32 %v1234_v2, %v2142_v29  ;;  %vm864_vm9 = vcmp.eq.f32.partialorder %v2169_v34, 0.0  ;;  %v865_v16 = vand.u32 2147483648, %v2169_v34  ;;  %v2329_v2 = vld [vmem:[%s2562_s2 + $0x30] sm:$0xff] }
 0x1d7   :  { %v610_v12 = vpop.xlane.xlu0 %609  ;;  %v861_v35 = vmul.f32 %v1236_v23, %v2169_v34  ;;  %v2249_v40 = vmax.f32 %v620_v22, 1e-12  ;;  %v1238_v41 = vpop.eup %1237  ;;  %v787_v32 = vsel %vm785_vm0, %v786_v61, %v784_v19  ;;  %v738_v42 = vsel %vm736_vm3, %v737_v21, %v735_v25 }
 0x1d8   :  { %vm1025_vm13 = vcmp.ge.s32.totalorder %v1408_v31, 0  ;;  %vm911_vm12 = vcmp.eq.f32.partialorder %v2173_v50, inf  ;;  %v910_v30 = vmul.f32 %v1238_v41, %v2173_v50  ;;  %vm913_vm5 = vcmp.eq.f32.partialorder %v2173_v50, 0.0  ;;  %v1278_v41 = vld [vmem:[%s2559_s3 + $0x20] sm:$0xff] }
 0x1d9   :  { %v863_v44 = vsel %vm862_vm6, %v2169_v34, %v861_v35  ;;  %v914_v58 = vand.u32 2147483648, %v2173_v50  ;;  %v791_v47 = vsel %vm790_vm15, %v2128_v0, %v789_v28  ;;  %1245 = vrsqrt.f32 %v2244_v62  ;;  %v596_v59 = vpop.xlane.xlu1 %595 }
 0x1da   :  { %v866_v33 = vsel %vm864_vm9, %v865_v16, %v863_v44  ;;  %v2272_v17 = vmax.f32 %v683_v37, 1e-12  ;;  %v856_v34 = vsel %vm855_vm11, %v2142_v29, %v854_v39  ;;  %v912_v48 = vsel %vm911_vm12, %v2173_v50, %v910_v30 }
 0x1db   :  { %v658_v46 = vpop.xlane.xlu0 %657  ;;  %v954_v24 = vsub.f32 %v738_v42, %v866_v33  ;;  %1247 = vrsqrt.f32 %v2249_v40  ;;  %v691_v49 = vadd.f32 %v672_v38, %v2194_v27  ;;  %v915_v51 = vsel %vm913_vm5, %v914_v58, %v912_v48  ;;  %v2365_v58 = vld [vmem:[%s2559_s3 + $0x60] sm:$0xff] }
 0x1dc   :  { %1249 = vrsqrt.f32 %v2272_v17  ;;  %v628_v43 = vadd.f32 %v610_v12, %v2266_v7  ;;  %v794_v52 = vsel %vm792_vm8, %v793_v6, %v791_v47  ;;  %v858_v45 = vand.u32 2147483648, %v2142_v29 }
 0x1dd   :  { %v970_v9 = vadd.f32 0.3, %v954_v24  ;;  %v961_v53 = vsub.f32 %v787_v32, %v915_v51  ;;  %vm918_vm2 = vcmp.eq.f32.partialorder %v2215_v36, inf  ;;  %v1240_v54 = vpop.eup %1239  ;;  %vm1026_vm7 = vcmp.ge.s32.totalorder %v2289_v5, 0  ;;  %v612_v31 = vpop.xlane.xlu1 %611 }
 0x1de   :  { %vm920_vm0 = vcmp.eq.f32.partialorder %v2215_v36, 0.0  ;;  %v2293_v55 = vmax.f32 %v691_v49, 1e-12  ;;  %v684_v0 = vadd.f32 %v658_v46, %v2201_v8  ;;  %v859_v61 = vsel %vm857_vm4, %v858_v45, %v856_v34  ;;  %v2305_v8 = vld [vmem:[%s2559_s3 + $0x10] sm:$0xff] }
 0x1df   :  { %v986_v50 = vmax.f32 %v970_v9, 0.0  ;;  %v674_v56 = vpop.xlane.xlu0 %673  ;;  %v1242_v26 = vpop.eup %1241  ;;  %v977_v27 = vadd.f32 0.3, %v961_v53  ;;  %v917_v63 = vmul.f32 %v1240_v54, %v2215_v36  ;;  %v921_v1 = vand.u32 2147483648, %v2215_v36  ;;  %v565_v46 = vld [vmem:[%s2562_s2 + $0x70] sm:$0xff] }
 0x1e0   :  { %v1244_v4 = vpop.eup %1243  ;;  %vm741_vm14 = vcmp.eq.f32.partialorder %v2217_v60, inf  ;;  %vm1017_vm3 = vcmp.ge.s32.totalorder %v2305_v8, 0  ;;  %vm727_vm15 = vcmp.eq.f32.partialorder %v2222_v11, inf  ;;  %v2309_v29 = vmax.f32 %v628_v43, 1e-12  ;;  %v558_v43 = vld [vmem:[%s2562_s2 + $0x38] sm:$0xff] }
 0x1e1   :  { %v1034_v13 = vsel %vm1018_vm10, %v986_v50, 0.0  ;;  %v993_v10 = vmax.f32 %v977_v27, 0.0  ;;  %v919_v3 = vsel %vm918_vm2, %v2215_v36, %v917_v63  ;;  %v726_v14 = vmul.f32 %v1244_v4, %v2222_v11 }
 0x1e2   :  { %1051 = vst.msk [vmem:[%s2563_s6 + $0x18] sm:$0xff] %vm1047_vm1, %v1034_v13  ;;  %1251 = vrsqrt.f32 %v2293_v55  ;;  %v922_v15 = vsel %vm920_vm0, %v921_v1, %v919_v3  ;;  %v740_v18 = vmul.f32 %v1242_v26, %v2217_v60  ;;  %v730_v20 = vand.u32 2147483648, %v2222_v11 }
 0x1e3   :  { %v2324_v12 = vmax.f32 %v684_v0, 1e-12  ;;  %v1041_v21 = vsel %vm1025_vm13, %v993_v10, 0.0  ;;  %v962_v22 = vsub.f32 %v794_v52, %v922_v15  ;;  %v728_v6 = vsel %vm727_vm15, %v2222_v11, %v726_v14  ;;  %v1246_v36 = vpop.eup %1245  ;;  %v598_v25 = vpop.xlane.xlu0 %597 }
 0x1e4   :  { %vm729_vm8 = vcmp.eq.f32.partialorder %v2222_v11, 0.0  ;;  %1058 = vst.msk [vmem:[%s2563_s6 + $0x50] sm:$0xff] %vm1047_vm1, %v1041_v21  ;;  %vm743_vm11 = vcmp.eq.f32.partialorder %v2217_v60, 0.0  ;;  %v744_v23 = vand.u32 2147483648, %v2217_v60  ;;  %vm797_vm6 = vcmp.eq.f32.partialorder %v2244_v62, inf  ;;  %v660_v52 = vpop.xlane.xlu1 %659 }
 0x1e5   :  { %v731_v19 = vsel %vm729_vm8, %v730_v20, %v728_v6  ;;  %v1248_v28 = vpop.eup %1247  ;;  %v978_v57 = vadd.f32 0.3, %v962_v22  ;;  %1253 = vrsqrt.f32 %v2309_v29  ;;  %v621_v11 = vadd.f32 %v596_v59, %v2329_v2 }
 0x1e6   :  { %v953_v35 = vsub.f32 %v731_v19, %v859_v61  ;;  %v1250_v37 = vpop.eup %1249  ;;  %v742_v39 = vsel %vm741_vm14, %v2217_v60, %v740_v18  ;;  %vm799_vm10 = vcmp.eq.f32.partialorder %v2244_v62, 0.0  ;;  %v800_v16 = vand.u32 2147483648, %v2244_v62 }
 0x1e7   :  { %vm1019_vm4 = vcmp.ge.s32.totalorder %v1278_v41, 0  ;;  %vm869_vm9 = vcmp.eq.f32.partialorder %v2272_v17, inf  ;;  %1255 = vrsqrt.f32 %v2324_v12  ;;  %v994_v32 = vmax.f32 %v978_v57, 0.0 }
 0x1e8   :  { %v969_v42 = vadd.f32 0.3, %v953_v35  ;;  %v796_v44 = vmul.f32 %v1246_v36, %v2244_v62  ;;  %v868_v38 = vmul.f32 %v1250_v37, %v2272_v17  ;;  %v747_v33 = vmul.f32 %v1248_v28, %v2249_v40  ;;  %v676_v15 = vpop.xlane.xlu1 %675  ;;  %v1004_v35 = vld [vmem:[%s2559_s3 + $0x28] sm:$0xff] }
 0x1e9   :  { %vm871_vm13 = vcmp.eq.f32.partialorder %v2272_v17, 0.0  ;;  %v872_v30 = vand.u32 2147483648, %v2272_v17  ;;  %v692_v47 = vadd.f32 %v674_v56, %v2266_v7  ;;  %v1042_v24 = vsel %vm1026_vm7, %v994_v32, 0.0 }
 0x1ea   :  { %v985_v34 = vmax.f32 %v969_v42, 0.0  ;;  %v870_v48 = vsel %vm869_vm9, %v2272_v17, %v868_v38  ;;  %v2371_v49 = vmax.f32 %v621_v11, 1e-12  ;;  %1059 = vst.msk [vmem:[%s2563_s6 + $0x58] sm:$0xff] %vm1047_vm1, %v1042_v24  ;;  %v745_v9 = vsel %vm743_vm11, %v744_v23, %v742_v39  ;;  %v614_v17 = vpop.xlane.xlu0 %613 }
 0x1eb   :  { %vm748_vm12 = vcmp.eq.f32.partialorder %v2249_v40, inf  ;;  %v873_v51 = vsel %vm871_vm13, %v872_v30, %v870_v48  ;;  %v629_v7 = vadd.f32 %v612_v31, %v565_v46  ;;  %v798_v54 = vsel %vm797_vm6, %v2244_v62, %v796_v44  ;;  %v1012_v48 = vld [vmem:[%s2559_s3 + $0x68] sm:$0xff] }
 0x1ec   :  { %v1252_v45 = vpop.eup %1251  ;;  %v1033_v53 = vsel %vm1017_vm3, %v985_v34, 0.0  ;;  %v955_v60 = vsub.f32 %v745_v9, %v873_v51  ;;  %vm1027_vm5 = vcmp.ge.s32.totalorder %v2365_v58, 0  ;;  %vm925_vm2 = vcmp.eq.f32.partialorder %v2293_v55, inf  ;;  %v2468_v51 = vld [vmem:[%s2559_s3 + $0x30] sm:$0xff] }
 0x1ed   :  { %1050 = vst.msk [vmem:[%s2563_s6 + $0x10] sm:$0xff] %vm1047_vm1, %v1033_v53  ;;  %v924_v50 = vmul.f32 %v1252_v45, %v2293_v55  ;;  %vm927_vm7 = vcmp.eq.f32.partialorder %v2293_v55, 0.0  ;;  %v928_v5 = vand.u32 2147483648, %v2293_v55  ;;  %v2397_v0 = vmax.f32 %v692_v47, 1e-12 }
 0x1ee   :  { %v749_v59 = vsel %vm748_vm12, %v2249_v40, %v747_v33  ;;  %v971_v56 = vadd.f32 0.3, %v955_v60  ;;  %1257 = vrsqrt.f32 %v2371_v49  ;;  %v622_v26 = vadd.f32 %v598_v25, %v558_v43  ;;  %v662_v18 = vpop.xlane.xlu0 %661 }
 0x1ef   :  { %v926_v61 = vsel %vm925_vm2, %v2293_v55, %v924_v50  ;;  %1259 = vrsqrt.f32 %v2397_v0  ;;  %v2405_v27 = vmax.f32 %v629_v7, 1e-12  ;;  %v685_v63 = vadd.f32 %v660_v52, %v2329_v2  ;;  %v1254_v1 = vpop.eup %1253  ;;  %v566_v55 = vld [vmem:[%s2562_s2 + $0x78] sm:$0xff] }
 0x1f0   :  { %v801_v4 = vsel %vm799_vm10, %v800_v16, %v798_v54  ;;  %v751_v13 = vand.u32 2147483648, %v2249_v40  ;;  %v987_v8 = vmax.f32 %v971_v56, 0.0  ;;  %v929_v10 = vsel %vm927_vm7, %v928_v5, %v926_v61  ;;  %v1013_v56 = vld [vmem:[%s2559_s3 + $0x70] sm:$0xff] }
 0x1f1   :  { %v1256_v3 = vpop.eup %1255  ;;  %vm750_vm0 = vcmp.eq.f32.partialorder %v2249_v40, 0.0  ;;  %v963_v14 = vsub.f32 %v801_v4, %v929_v10  ;;  %vm876_vm14 = vcmp.eq.f32.partialorder %v2324_v12, inf  ;;  %vm878_vm3 = vcmp.eq.f32.partialorder %v2324_v12, 0.0 }
 0x1f2   :  { %v752_v62 = vsel %vm750_vm0, %v751_v13, %v749_v59  ;;  %v1035_v20 = vsel %vm1019_vm4, %v987_v8, 0.0  ;;  %v875_v2 = vmul.f32 %v1256_v3, %v2324_v12  ;;  %v2419_v21 = vmax.f32 %v622_v26, 1e-12  ;;  %v678_v41 = vpop.xlane.xlu0 %677 }
 0x1f3   :  { %1052 = vst.msk [vmem:[%s2563_s6 + $0x20] sm:$0xff] %vm1047_vm1, %v1035_v20  ;;  %v979_v40 = vadd.f32 0.3, %v963_v14  ;;  %v879_v22 = vand.u32 2147483648, %v2324_v12  ;;  %1261 = vrsqrt.f32 %v2405_v27  ;;  %v2427_v6 = vmax.f32 %v685_v63, 1e-12 }
 0x1f4   :  { %v877_v36 = vsel %vm876_vm14, %v2324_v12, %v875_v2  ;;  %v630_v23 = vadd.f32 %v614_v17, %v566_v55  ;;  %v693_v19 = vadd.f32 %v676_v15, %v565_v46  ;;  %v686_v31 = vadd.f32 %v662_v18, %v558_v43 }
 0x1f5   :  { %v803_v25 = vmul.f32 %v1254_v1, %v2309_v29  ;;  %v995_v28 = vmax.f32 %v979_v40, 0.0  ;;  %v880_v57 = vsel %vm878_vm3, %v879_v22, %v877_v36  ;;  %1263 = vrsqrt.f32 %v2427_v6 }
 0x1f6   :  { %v956_v11 = vsub.f32 %v752_v62, %v880_v57  ;;  %1265 = vrsqrt.f32 %v2419_v21  ;;  %v2440_v39 = vmax.f32 %v630_v23, 1e-12  ;;  %v2442_v16 = vmax.f32 %v693_v19, 1e-12 }
 0x1f7   :  { %v1043_v37 = vsel %vm1027_vm5, %v995_v28, 0.0  ;;  %vm804_vm15 = vcmp.eq.f32.partialorder %v2309_v29, inf  ;;  %v2449_v42 = vmax.f32 %v686_v31, 1e-12  ;;  %vm806_vm8 = vcmp.eq.f32.partialorder %v2309_v29, 0.0 }
 0x1f8   :  { %v1258_v32 = vpop.eup %1257  ;;  %1060 = vst.msk [vmem:[%s2563_s6 + $0x60] sm:$0xff] %vm1047_vm1, %v1043_v37  ;;  %v972_v12 = vadd.f32 0.3, %v956_v11  ;;  %v805_v38 = vsel %vm804_vm15, %v2309_v29, %v803_v25  ;;  %vm1020_vm11 = vcmp.ge.s32.totalorder %v1004_v35, 0  ;;  %1267 = vrsqrt.f32 %v2440_v39 }
 0x1f9   :  { %v1260_v44 = vpop.eup %1259  ;;  %1269 = vrsqrt.f32 %v2442_v16  ;;  %v694_v30 = vadd.f32 %v678_v41, %v566_v55  ;;  %v807_v58 = vand.u32 2147483648, %v2309_v29  ;;  %vm932_vm6 = vcmp.eq.f32.partialorder %v2397_v0, inf }
 0x1fa   :  { %v988_v46 = vmax.f32 %v972_v12, 0.0  ;;  %v931_v33 = vmul.f32 %v1260_v44, %v2397_v0  ;;  %vm934_vm10 = vcmp.eq.f32.partialorder %v2397_v0, 0.0  ;;  %v935_v47 = vand.u32 2147483648, %v2397_v0 }
 0x1fb   :  { %v754_v34 = vmul.f32 %v1258_v32, %v2371_v49  ;;  %1271 = vrsqrt.f32 %v2449_v42  ;;  %v808_v43 = vsel %vm806_vm8, %v807_v58, %v805_v38  ;;  %v2477_v45 = vmax.f32 %v694_v30, 1e-12 }
 0x1fc   :  { %v1036_v24 = vsel %vm1020_vm11, %v988_v46, 0.0  ;;  %v933_v9 = vsel %vm932_vm6, %v2397_v0, %v931_v33  ;;  %vm755_vm4 = vcmp.eq.f32.partialorder %v2371_v49, inf  ;;  %vm757_vm9 = vcmp.eq.f32.partialorder %v2371_v49, 0.0 }
 0x1fd   :  { %v1262_v7 = vpop.eup %1261  ;;  %1053 = vst.msk [vmem:[%s2563_s6 + $0x28] sm:$0xff] %vm1047_vm1, %v1036_v24  ;;  %v936_v52 = vsel %vm934_vm10, %v935_v47, %v933_v9  ;;  %vm1028_vm13 = vcmp.ge.s32.totalorder %v1012_v48, 0  ;;  %vm1021_vm12 = vcmp.ge.s32.totalorder %v2468_v51, 0  ;;  %v756_v29 = vsel %vm755_vm4, %v2371_v49, %v754_v34 }
 0x1fe   :  { %v964_v17 = vsub.f32 %v808_v43, %v936_v52  ;;  %1273 = vrsqrt.f32 %v2477_v45  ;;  %v758_v5 = vand.u32 2147483648, %v2371_v49  ;;  %v810_v0 = vmul.f32 %v1262_v7, %v2405_v27 }
 0x1ff   :  { %v1264_v53 = vpop.eup %1263  ;;  %vm883_vm5 = vcmp.eq.f32.partialorder %v2427_v6, inf  ;;  %v886_v59 = vand.u32 2147483648, %v2427_v6  ;;  %vm811_vm2 = vcmp.eq.f32.partialorder %v2405_v27, inf  ;;  %vm885_vm7 = vcmp.eq.f32.partialorder %v2427_v6, 0.0 }
 0x200   :  { %v1266_v54 = vpop.eup %1265  ;;  %v980_v60 = vadd.f32 0.3, %v964_v17  ;;  %v882_v50 = vmul.f32 %v1264_v53, %v2427_v6  ;;  %v759_v1 = vsel %vm757_vm9, %v758_v5, %v756_v29  ;;  %vm813_vm0 = vcmp.eq.f32.partialorder %v2405_v27, 0.0 }
 0x201   :  { %v761_v4 = vmul.f32 %v1266_v54, %v2419_v21  ;;  %v814_v3 = vand.u32 2147483648, %v2405_v27  ;;  %vm762_vm14 = vcmp.eq.f32.partialorder %v2419_v21, inf  ;;  %vm1029_vm3 = vcmp.ge.s32.totalorder %v1013_v56, 0 }
 0x202   :  { %v996_v26 = vmax.f32 %v980_v60, 0.0  ;;  %v884_v61 = vsel %vm883_vm5, %v2427_v6, %v882_v50  ;;  %v1268_v63 = vpop.eup %1267  ;;  %v812_v49 = vsel %vm811_vm2, %v2405_v27, %v810_v0  ;;  %v765_v55 = vand.u32 2147483648, %v2419_v21 }
 0x203   :  { %v887_v13 = vsel %vm885_vm7, %v886_v59, %v884_v61  ;;  %v1270_v8 = vpop.eup %1269  ;;  %vm939_vm15 = vcmp.eq.f32.partialorder %v2442_v16, inf  ;;  %vm941_vm8 = vcmp.eq.f32.partialorder %v2442_v16, 0.0  ;;  %v942_v20 = vand.u32 2147483648, %v2442_v16 }
 0x204   :  { %v1044_v10 = vsel %vm1028_vm13, %v996_v26, 0.0  ;;  %v957_v14 = vsub.f32 %v759_v1, %v887_v13  ;;  %v938_v15 = vmul.f32 %v1270_v8, %v2442_v16  ;;  %vm890_vm11 = vcmp.eq.f32.partialorder %v2449_v42, inf }
 0x205   :  { %1061 = vst.msk [vmem:[%s2563_s6 + $0x68] sm:$0xff] %vm1047_vm1, %v1044_v10  ;;  %v1272_v18 = vpop.eup %1271  ;;  %v763_v2 = vsel %vm762_vm14, %v2419_v21, %v761_v4  ;;  %v817_v40 = vmul.f32 %v1268_v63, %v2440_v39  ;;  %v815_v36 = vsel %vm813_vm0, %v814_v3, %v812_v49  ;;  %v893_v31 = vand.u32 2147483648, %v2449_v42 }
 0x206   :  { %v973_v62 = vadd.f32 0.3, %v957_v14  ;;  %v940_v22 = vsel %vm939_vm15, %v2442_v16, %v938_v15  ;;  %v889_v6 = vmul.f32 %v1272_v18, %v2449_v42  ;;  %vm764_vm6 = vcmp.eq.f32.partialorder %v2419_v21, 0.0  ;;  %v1006_v16 = vld [vmem:[%s2559_s3 + $0x38] sm:$0xff] }
 0x207   :  { %v943_v19 = vsel %vm941_vm8, %v942_v20, %v940_v22  ;;  %vm892_vm10 = vcmp.eq.f32.partialorder %v2449_v42, 0.0  ;;  %v766_v35 = vsel %vm764_vm6, %v765_v55, %v763_v2  ;;  %vm818_vm4 = vcmp.eq.f32.partialorder %v2440_v39, inf }
 0x208   :  { %v989_v23 = vmax.f32 %v973_v62, 0.0  ;;  %v965_v25 = vsub.f32 %v815_v36, %v943_v19  ;;  %v891_v28 = vsel %vm890_vm11, %v2449_v42, %v889_v6  ;;  %v1274_v57 = vpop.eup %1273  ;;  %v819_v21 = vsel %vm818_vm4, %v2440_v39, %v817_v40 }
 0x209   :  { %v894_v27 = vsel %vm892_vm10, %v893_v31, %v891_v28  ;;  %v945_v32 = vmul.f32 %v1274_v57, %v2477_v45  ;;  %vm820_vm9 = vcmp.eq.f32.partialorder %v2440_v39, 0.0  ;;  %v821_v12 = vand.u32 2147483648, %v2440_v39  ;;  %v1014_v39 = vld [vmem:[%s2559_s3 + $0x78] sm:$0xff] }
 0x20a   :  { %v1037_v11 = vsel %vm1021_vm12, %v989_v23, 0.0  ;;  %v981_v37 = vadd.f32 0.3, %v965_v25  ;;  %v958_v41 = vsub.f32 %v766_v35, %v894_v27  ;;  %vm946_vm13 = vcmp.eq.f32.partialorder %v2477_v45, inf }
 0x20b   :  { %1054 = vst.msk [vmem:[%s2563_s6 + $0x30] sm:$0xff] %vm1047_vm1, %v1037_v11  ;;  %v949_v42 = vand.u32 2147483648, %v2477_v45  ;;  %v947_v46 = vsel %vm946_vm13, %v2477_v45, %v945_v32  ;;  %vm948_vm12 = vcmp.eq.f32.partialorder %v2477_v45, 0.0  ;;  %v822_v33 = vsel %vm820_vm9, %v821_v12, %v819_v21 }
 0x20c   :  { %v997_v44 = vmax.f32 %v981_v37, 0.0  ;;  %v974_v38 = vadd.f32 0.3, %v958_v41  ;;  %vm1022_vm5 = vcmp.ge.s32.totalorder %v1006_v16, 0  ;;  %vm1030_vm2 = vcmp.ge.s32.totalorder %v1014_v39, 0 }
 0x20d   :  { %v950_v30 = vsel %vm948_vm12, %v949_v42, %v947_v46 }
 0x20e   :  { %v1045_v58 = vsel %vm1029_vm3, %v997_v44, 0.0  ;;  %v990_v47 = vmax.f32 %v974_v38, 0.0  ;;  %v966_v24 = vsub.f32 %v822_v33, %v950_v30 }
 0x20f   :  { %1062 = vst.msk [vmem:[%s2563_s6 + $0x70] sm:$0xff] %vm1047_vm1, %v1045_v58 }
 0x210   :  { %v1038_v34 = vsel %vm1022_vm5, %v990_v47, 0.0  ;;  %v982_v48 = vadd.f32 0.3, %v966_v24 }
 0x211   :  { %1055 = vst.msk [vmem:[%s2563_s6 + $0x38] sm:$0xff] %vm1047_vm1, %v1038_v34 }
 0x212   :  { %v998_v9 = vmax.f32 %v982_v48, 0.0 }
 0x214   :  { %v1046_v51 = vsel %vm1030_vm2, %v998_v9, 0.0 }
 0x215   :  { %1063 = vst.msk [vmem:[%s2563_s6 + $0x78] sm:$0xff] %vm1047_vm1, %v1046_v51 }

</bundles_post_ra>
